<compile_context>
chip_gen: v5e
topology: v5e:2x2
jax: 0.10.0
libtpu: 0.0.40
codegen_flags: <defaults>
</compile_context>

<pallas_src>
import functools

import numpy as np

import jax
import jax.numpy as jnp
from jax import lax
from jax.experimental import pallas as pl
from jax.experimental.pallas import tpu as pltpu


# ----------------------------------------------------------------------------
# Fused kernel: one (image, output-row-tile) per grid step.
# ----------------------------------------------------------------------------
def _fused_kernel(*refs, stride, th_out, wo, w_pad, col_off, has_expand, use_res):
    it = iter(refs)
    x_ref = next(it)                        # (1, P, inp)  flattened padded pixels
    if has_expand:
        mask_ref = next(it)                 # (1, P, 1)    1.0 inside image, 0.0 pad
        w_exp_ref = next(it)                # (inp, hidden)
        s_exp_ref = next(it)                # (1, hidden)
        b_exp_ref = next(it)                # (1, hidden)
    w_dw_ref = next(it)                     # (9, hidden)
    s_dw_ref = next(it)                     # (1, hidden)
    b_dw_ref = next(it)                     # (1, hidden)
    w_proj_ref = next(it)                   # (hidden, oup)
    s_proj_ref = next(it)                   # (1, oup)
    b_proj_ref = next(it)                   # (1, oup)
    res_ref = next(it) if use_res else None  # (1, th_out, W, inp)
    o_ref = next(it)                        # (1, th_out, Wo, oup)
    h_scr = next(it)                        # (P, hidden)  VMEM scratch

    hidden = h_scr.shape[-1]

    # ---- 1x1 expand as a single (P, inp) @ (inp, hidden) MXU matmul --------
    x2d = x_ref[0]
    if has_expand:
        y = jnp.dot(x2d, w_exp_ref[...], preferred_element_type=jnp.float32)
        y = jnp.clip(y * s_exp_ref[...] + b_exp_ref[...], 0.0, 6.0)
        y = y * mask_ref[0]                 # zero the depthwise padding ring
        h_scr[...] = y
    else:
        h_scr[...] = x2d                    # pad ring already zero in the input

    # Hoist resident weights / BN params out of the row loop.
    w_dw = w_dw_ref[...]
    s_dw = s_dw_ref[...]
    b_dw = b_dw_ref[...]
    w_pj = w_proj_ref[...]
    s_pj = s_proj_ref[...]
    b_pj = b_proj_ref[...]

    # ---- 3x3 depthwise (stride folded in) + BN + ReLU6, 1x1 project + BN ---
    for r in range(th_out):                 # static loop over output rows
        acc = jnp.zeros((wo, hidden), jnp.float32)
        for dy in range(3):
            base = (stride * r + dy) * w_pad
            for dx in range(3):
                tap = h_scr[pl.ds(base + col_off[dx], wo), :]
                acc = acc + tap * w_dw[3 * dy + dx:3 * dy + dx + 1, :]
        h = jnp.clip(acc * s_dw + b_dw, 0.0, 6.0)
        out = jnp.dot(h, w_pj, preferred_element_type=jnp.float32)
        out = out * s_pj + b_pj
        if use_res:
            out = out + res_ref[0, r]
        o_ref[0, r] = out.astype(o_ref.dtype)


# ----------------------------------------------------------------------------
# Forward pass (NCHW in/out, like the PyTorch module)
# ----------------------------------------------------------------------------
def inverted_residual_forward(x_nchw, params, *, inp, oup, stride, expand_ratio,
                              row_tile=8):
    assert stride in (1, 2)
    has_expand = expand_ratio != 1
    hidden = int(round(inp * expand_ratio))
    use_res = (stride == 1) and (inp == oup)

    x = jnp.transpose(x_nchw, (0, 2, 3, 1)).astype(jnp.float32)   # NHWC
    N, H, W, _ = x.shape
    Ho = (H - 1) // stride + 1
    Wo = (W - 1) // stride + 1
    th = min(row_tile, Ho)                  # output rows per tile
    n_tiles = -(-Ho // th)
    Ho_pad = n_tiles * th
    w_pad = W + 2
    rows_in = stride * th + 2               # input rows (incl. halo) per tile
    P = rows_in * w_pad                     # flattened padded pixels per tile

    # 1px spatial halo (+ extra bottom rows so row tiles divide evenly; the
    # corresponding output rows are sliced off).  Only the SMALL input tensor
    # is touched here -- the expanded hidden activation never leaves VMEM.
    pad_bottom = 1 + (stride * Ho_pad - H)
    xp = jnp.pad(x, ((0, 0), (1, pad_bottom), (1, 1), (0, 0)))

    if stride == 2:
        # De-interleave columns (even | odd) so the in-kernel stride-2 taps
        # become contiguous slices (no strided vector loads required).
        n_even = (w_pad + 1) // 2
        col_perm = np.concatenate([np.arange(0, w_pad, 2), np.arange(1, w_pad, 2)])
        col_off = (0, n_even, 1)            # tap column offsets for dx = 0, 1, 2
        xp = xp[:, :, col_perm, :]
    else:
        col_perm = np.arange(w_pad)
        col_off = (0, 1, 2)

    # Materialize the overlapping row windows per tile; flatten each window's
    # pixels row-major and merge (batch, tile) into one leading axis.
    row_start = np.arange(n_tiles) * stride * th
    row_idx = row_start[:, None] + np.arange(rows_in)[None, :]    # (n_tiles, rows_in)
    x_tiles = xp[:, row_idx, :, :].reshape(N * n_tiles, P, inp)

    inputs = [x_tiles]
    in_specs = [pl.BlockSpec((1, P, inp),
                             lambda n, t: (n * n_tiles + t, 0, 0))]

    if has_expand:
        # 1/0 mask of real image pixels: the depthwise padding ring must stay
        # zero even though the expand's folded-BN bias is nonzero there.
        row_ok = (row_idx >= 1) & (row_idx <= H)
        col_ok = (col_perm >= 1) & (col_perm <= W)
        mask = (row_ok[:, :, None] & col_ok[None, None, :]).astype(np.float32)
        mask = jnp.asarray(mask.reshape(n_tiles, P, 1))
        inputs += [mask, params["w_exp"], params["s_exp"], params["b_exp"]]
        in_specs += [
            pl.BlockSpec((1, P, 1), lambda n, t: (t, 0, 0)),
            pl.BlockSpec((inp, hidden), lambda n, t: (0, 0)),
            pl.BlockSpec((1, hidden), lambda n, t: (0, 0)),
            pl.BlockSpec((1, hidden), lambda n, t: (0, 0)),
        ]

    inputs += [params["w_dw"], params["s_dw"], params["b_dw"],
               params["w_proj"], params["s_proj"], params["b_proj"]]
    in_specs += [
        pl.BlockSpec((9, hidden), lambda n, t: (0, 0)),
        pl.BlockSpec((1, hidden), lambda n, t: (0, 0)),
        pl.BlockSpec((1, hidden), lambda n, t: (0, 0)),
        pl.BlockSpec((hidden, oup), lambda n, t: (0, 0)),
        pl.BlockSpec((1, oup), lambda n, t: (0, 0)),
        pl.BlockSpec((1, oup), lambda n, t: (0, 0)),
    ]

    if use_res:
        xres = x if Ho_pad == H else jnp.pad(
            x, ((0, 0), (0, Ho_pad - H), (0, 0), (0, 0)))
        res_tiles = xres.reshape(N * n_tiles, th, W, inp)
        inputs.append(res_tiles)
        in_specs.append(pl.BlockSpec((1, th, W, inp),
                                     lambda n, t: (n * n_tiles + t, 0, 0, 0)))

    kernel = functools.partial(
        _fused_kernel, stride=stride, th_out=th, wo=Wo, w_pad=w_pad,
        col_off=col_off, has_expand=has_expand, use_res=use_res)

    out4 = pl.pallas_call(
        kernel,
        out_shape=jax.ShapeDtypeStruct((N * n_tiles, th, Wo, oup), jnp.float32),
        grid_spec=pltpu.PrefetchScalarGridSpec(
            num_scalar_prefetch=0,
            grid=(N, n_tiles),
            in_specs=in_specs,
            out_specs=pl.BlockSpec((1, th, Wo, oup),
                                   lambda n, t: (n * n_tiles + t, 0, 0, 0)),
            scratch_shapes=[pltpu.VMEM((P, hidden), jnp.float32)],
        ),
        compiler_params=pltpu.CompilerParams(
            dimension_semantics=("parallel", "parallel")),
    )(*inputs)

    out = out4.reshape(N, Ho_pad, Wo, oup)[:, :Ho]
    return jnp.transpose(out, (0, 3, 1, 2))                       # back to NCHW


# ----------------------------------------------------------------------------
# Parameter construction (deterministic, synthetic; BN folded to scale/bias)
# ----------------------------------------------------------------------------
def _fold_bn(gamma, beta, mean, var, eps=1e-5):
    scale = gamma / jnp.sqrt(var + eps)
    bias = beta - mean * scale
    return scale.reshape(1, -1), bias.reshape(1, -1)


def _bn_params(key, c):
    k1, k2, k3, k4 = jax.random.split(key, 4)
    gamma = 1.0 + 0.1 * jax.random.normal(k1, (c,), jnp.float32)
    beta = 0.1 * jax.random.normal(k2, (c,), jnp.float32)
    mean = 0.1 * jax.random.normal(k3, (c,), jnp.float32)
    var = jax.random.uniform(k4, (c,), jnp.float32, 0.5, 1.5)
    return _fold_bn(gamma, beta, mean, var)


def init_inverted_residual_params(key, inp, oup, expand_ratio):
    hidden = int(round(inp * expand_ratio))
    keys = jax.random.split(key, 6)
    params = {}
    if expand_ratio != 1:
        params["w_exp"] = 0.3 * jax.random.normal(keys[0], (inp, hidden), jnp.float32)
        params["s_exp"], params["b_exp"] = _bn_params(keys[1], hidden)
    w33 = 0.3 * jax.random.normal(keys[2], (3, 3, hidden), jnp.float32)
    params["w_dw"] = w33.reshape(9, hidden)
    params["s_dw"], params["b_dw"] = _bn_params(keys[3], hidden)
    params["w_proj"] = 0.3 * jax.random.normal(keys[4], (hidden, oup), jnp.float32)
    params["s_proj"], params["b_proj"] = _bn_params(keys[5], oup)
    return params, hidden


# ----------------------------------------------------------------------------
# Pure-JAX reference (for a sanity check)
# ----------------------------------------------------------------------------
def reference_forward(x_nchw, params, *, inp, oup, stride, expand_ratio):
    x = jnp.transpose(x_nchw, (0, 2, 3, 1)).astype(jnp.float32)
    h = x
    if expand_ratio != 1:
        h = jnp.einsum("nhwc,cd->nhwd", h, params["w_exp"])
        h = jnp.clip(h * params["s_exp"][0] + params["b_exp"][0], 0.0, 6.0)
    hidden = h.shape[-1]
    dw = params["w_dw"].reshape(3, 3, 1, hidden)
    h = lax.conv_general_dilated(h, dw, (stride, stride), ((1, 1), (1, 1)),
                                 dimension_numbers=("NHWC", "HWIO", "NHWC"),
                                 feature_group_count=hidden)
    h = jnp.clip(h * params["s_dw"][0] + params["b_dw"][0], 0.0, 6.0)
    out = jnp.einsum("nhwc,cd->nhwd", h, params["w_proj"])
    out = out * params["s_proj"][0] + params["b_proj"][0]
    if stride == 1 and inp == oup:
        out = out + x
    return jnp.transpose(out, (0, 3, 1, 2))


if __name__ == "__main__":
    key = jax.random.PRNGKey(0)
    configs = [
        # (inp, oup, stride, expand_ratio)
        (4, 4, 1, 6),    # expand + residual
        (4, 8, 2, 6),    # expand + in-kernel stride-2 subsampling
        (8, 8, 1, 1),    # no expand (expand_ratio == 1) + residual
    ]
    for inp, oup, stride, er in configs:
        kx, kp, key = jax.random.split(key, 3)
        x = jax.random.normal(kx, (2, inp, 16, 16), jnp.float32)   # NCHW
        params, _ = init_inverted_residual_params(kp, inp, oup, er)

        out = jax.block_until_ready(
            inverted_residual_forward(x, params, inp=inp, oup=oup,
                                      stride=stride, expand_ratio=er))
        ref = jax.block_until_ready(
            reference_forward(x, params, inp=inp, oup=oup,
                              stride=stride, expand_ratio=er))

        assert out.shape == ref.shape, (out.shape, ref.shape)
        err = float(jnp.max(jnp.abs(out - ref)))
        assert err < 5e-2, (inp, oup, stride, er, err)

    print("KERNEL_OK")
</pallas_src>

<mosaic_0001>
module attributes {stable_mosaic.version = 11 : i64} {
  func.func @_fused_kernel(%arg0: i32, %arg1: i32, %arg2: memref<1x180x4xf32, #tpu.memory_space<vmem>>, %arg3: memref<1x180x1xf32, #tpu.memory_space<vmem>>, %arg4: memref<4x24xf32, #tpu.memory_space<vmem>>, %arg5: memref<1x24xf32, #tpu.memory_space<vmem>>, %arg6: memref<1x24xf32, #tpu.memory_space<vmem>>, %arg7: memref<9x24xf32, #tpu.memory_space<vmem>>, %arg8: memref<1x24xf32, #tpu.memory_space<vmem>>, %arg9: memref<1x24xf32, #tpu.memory_space<vmem>>, %arg10: memref<24x4xf32, #tpu.memory_space<vmem>>, %arg11: memref<1x4xf32, #tpu.memory_space<vmem>>, %arg12: memref<1x4xf32, #tpu.memory_space<vmem>>, %arg13: memref<1x8x16x4xf32, #tpu.memory_space<vmem>>, %arg14: memref<1x8x16x4xf32, #tpu.memory_space<vmem>>, %arg15: memref<180x24xf32, #tpu.memory_space<vmem>>) attributes {dimension_semantics = [#tpu.dimension_semantics<parallel>, #tpu.dimension_semantics<parallel>], iteration_bounds = array<i64: 2, 2>, scalar_prefetch = 0 : i64, scratch_operands = 1 : i64, tpu.core_type = #tpu.core_type<tc>, window_params = [{transform_indices = @transform_0, window_bounds = array<i64: 1, 180, 4>}, {transform_indices = @transform_1, window_bounds = array<i64: 1, 180, 1>}, {pipeline_mode = #tpu.pipeline_mode<synchronous>, transform_indices = @transform_2, window_bounds = array<i64: 4, 24>}, {pipeline_mode = #tpu.pipeline_mode<synchronous>, transform_indices = @transform_3, window_bounds = array<i64: 1, 24>}, {pipeline_mode = #tpu.pipeline_mode<synchronous>, transform_indices = @transform_4, window_bounds = array<i64: 1, 24>}, {pipeline_mode = #tpu.pipeline_mode<synchronous>, transform_indices = @transform_5, window_bounds = array<i64: 9, 24>}, {pipeline_mode = #tpu.pipeline_mode<synchronous>, transform_indices = @transform_6, window_bounds = array<i64: 1, 24>}, {pipeline_mode = #tpu.pipeline_mode<synchronous>, transform_indices = @transform_7, window_bounds = array<i64: 1, 24>}, {pipeline_mode = #tpu.pipeline_mode<synchronous>, transform_indices = @transform_8, window_bounds = array<i64: 24, 4>}, {pipeline_mode = #tpu.pipeline_mode<synchronous>, transform_indices = @transform_9, window_bounds = array<i64: 1, 4>}, {pipeline_mode = #tpu.pipeline_mode<synchronous>, transform_indices = @transform_10, window_bounds = array<i64: 1, 4>}, {transform_indices = @transform_11, window_bounds = array<i64: 1, 8, 16, 4>}, {transform_indices = @transform_12, window_bounds = array<i64: 1, 8, 16, 4>}]} {
    %c0 = arith.constant 0 : index
    %c0_0 = arith.constant 0 : index
    %c0_1 = arith.constant 0 : index
    %0 = vector.load %arg2[%c0, %c0_0, %c0_1] : memref<1x180x4xf32, #tpu.memory_space<vmem>>, vector<1x180x4xf32>
    %1 = vector.shape_cast %0 : vector<1x180x4xf32> to vector<180x4xf32>
    %c0_2 = arith.constant 0 : index
    %c0_3 = arith.constant 0 : index
    %2 = vector.load %arg4[%c0_2, %c0_3] : memref<4x24xf32, #tpu.memory_space<vmem>>, vector<4x24xf32>
    %cst = arith.constant dense<0.000000e+00> : vector<180x24xf32>
    %3 = tpu.matmul %1, %2, %cst {dimension_numbers = #tpu.dot_dimension_numbers<[1], [0], [0], [1], [0, 0, 1, 1], [], []>} : vector<180x4xf32>, vector<4x24xf32>, vector<180x24xf32> -> vector<180x24xf32>
    %c0_4 = arith.constant 0 : index
    %c0_5 = arith.constant 0 : index
    %4 = vector.load %arg5[%c0_4, %c0_5] : memref<1x24xf32, #tpu.memory_space<vmem>>, vector<1x24xf32>
    %5 = vector.broadcast %4 : vector<1x24xf32> to vector<180x24xf32>
    %6 = arith.mulf %3, %5 : vector<180x24xf32>
    %c0_6 = arith.constant 0 : index
    %c0_7 = arith.constant 0 : index
    %7 = vector.load %arg6[%c0_6, %c0_7] : memref<1x24xf32, #tpu.memory_space<vmem>>, vector<1x24xf32>
    %8 = vector.broadcast %7 : vector<1x24xf32> to vector<180x24xf32>
    %9 = arith.addf %6, %8 : vector<180x24xf32>
    %cst_8 = arith.constant 0.000000e+00 : f32
    %cst_9 = arith.constant 6.000000e+00 : f32
    %10 = vector.broadcast %cst_8 : f32 to vector<180x24xf32>
    %11 = arith.maximumf %10, %9 : vector<180x24xf32>
    %12 = vector.broadcast %cst_9 : f32 to vector<180x24xf32>
    %13 = arith.minimumf %12, %11 : vector<180x24xf32>
    %c0_10 = arith.constant 0 : index
    %c0_11 = arith.constant 0 : index
    %c0_12 = arith.constant 0 : index
    %14 = vector.load %arg3[%c0_10, %c0_11, %c0_12] : memref<1x180x1xf32, #tpu.memory_space<vmem>>, vector<1x180x1xf32>
    %15 = vector.shape_cast %14 : vector<1x180x1xf32> to vector<180x1xf32>
    %16 = vector.broadcast %15 : vector<180x1xf32> to vector<180x24xf32>
    %17 = arith.mulf %13, %16 : vector<180x24xf32>
    %c0_13 = arith.constant 0 : index
    %c0_14 = arith.constant 0 : index
    %18 = vector.load %arg15[%c0_13, %c0_14] : memref<180x24xf32, #tpu.memory_space<vmem>>, vector<180x24xf32>
    tpu.vector_store %arg15[%c0_13, %c0_14], %17 {strides = array<i32>} : memref<180x24xf32, #tpu.memory_space<vmem>>, vector<180x24xf32>,
    %c0_15 = arith.constant 0 : index
    %c0_16 = arith.constant 0 : index
    %19 = vector.load %arg7[%c0_15, %c0_16] : memref<9x24xf32, #tpu.memory_space<vmem>>, vector<9x24xf32>
    %c0_17 = arith.constant 0 : index
    %c0_18 = arith.constant 0 : index
    %20 = vector.load %arg8[%c0_17, %c0_18] : memref<1x24xf32, #tpu.memory_space<vmem>>, vector<1x24xf32>
    %c0_19 = arith.constant 0 : index
    %c0_20 = arith.constant 0 : index
    %21 = vector.load %arg9[%c0_19, %c0_20] : memref<1x24xf32, #tpu.memory_space<vmem>>, vector<1x24xf32>
    %c0_21 = arith.constant 0 : index
    %c0_22 = arith.constant 0 : index
    %22 = vector.load %arg10[%c0_21, %c0_22] : memref<24x4xf32, #tpu.memory_space<vmem>>, vector<24x4xf32>
    %c0_23 = arith.constant 0 : index
    %c0_24 = arith.constant 0 : index
    %23 = vector.load %arg11[%c0_23, %c0_24] : memref<1x4xf32, #tpu.memory_space<vmem>>, vector<1x4xf32>
    %c0_25 = arith.constant 0 : index
    %c0_26 = arith.constant 0 : index
    %24 = vector.load %arg12[%c0_25, %c0_26] : memref<1x4xf32, #tpu.memory_space<vmem>>, vector<1x4xf32>
    %cst_27 = arith.constant 0.000000e+00 : f32
    %25 = vector.broadcast %cst_27 : f32 to vector<16x24xf32>
    %c0_28 = arith.constant 0 : index
    %c0_29 = arith.constant 0 : index
    %26 = vector.load %arg15[%c0_28, %c0_29] : memref<180x24xf32, #tpu.memory_space<vmem>>, vector<16x24xf32>
    %27 = vector.extract_strided_slice %19 {offsets = [0, 0], sizes = [1, 24], strides = [1, 1]} : vector<9x24xf32> to vector<1x24xf32>
    %28 = vector.broadcast %27 : vector<1x24xf32> to vector<16x24xf32>
    %29 = arith.mulf %26, %28 : vector<16x24xf32>
    %30 = arith.addf %25, %29 : vector<16x24xf32>
    %c1 = arith.constant 1 : index
    %c0_30 = arith.constant 0 : index
    %31 = vector.load %arg15[%c1, %c0_30] : memref<180x24xf32, #tpu.memory_space<vmem>>, vector<16x24xf32>
    %32 = vector.extract_strided_slice %19 {offsets = [1, 0], sizes = [1, 24], strides = [1, 1]} : vector<9x24xf32> to vector<1x24xf32>
    %33 = vector.broadcast %32 : vector<1x24xf32> to vector<16x24xf32>
    %34 = arith.mulf %31, %33 : vector<16x24xf32>
    %35 = arith.addf %30, %34 : vector<16x24xf32>
    %c2 = arith.constant 2 : index
    %c0_31 = arith.constant 0 : index
    %36 = vector.load %arg15[%c2, %c0_31] : memref<180x24xf32, #tpu.memory_space<vmem>>, vector<16x24xf32>
    %37 = vector.extract_strided_slice %19 {offsets = [2, 0], sizes = [1, 24], strides = [1, 1]} : vector<9x24xf32> to vector<1x24xf32>
    %38 = vector.broadcast %37 : vector<1x24xf32> to vector<16x24xf32>
    %39 = arith.mulf %36, %38 : vector<16x24xf32>
    %40 = arith.addf %35, %39 : vector<16x24xf32>
    %c18 = arith.constant 18 : index
    %c0_32 = arith.constant 0 : index
    %41 = vector.load %arg15[%c18, %c0_32] : memref<180x24xf32, #tpu.memory_space<vmem>>, vector<16x24xf32>
    %42 = vector.extract_strided_slice %19 {offsets = [3, 0], sizes = [1, 24], strides = [1, 1]} : vector<9x24xf32> to vector<1x24xf32>
    %43 = vector.broadcast %42 : vector<1x24xf32> to vector<16x24xf32>
    %44 = arith.mulf %41, %43 : vector<16x24xf32>
    %45 = arith.addf %40, %44 : vector<16x24xf32>
    %c19 = arith.constant 19 : index
    %c0_33 = arith.constant 0 : index
    %46 = vector.load %arg15[%c19, %c0_33] : memref<180x24xf32, #tpu.memory_space<vmem>>, vector<16x24xf32>
    %47 = vector.extract_strided_slice %19 {offsets = [4, 0], sizes = [1, 24], strides = [1, 1]} : vector<9x24xf32> to vector<1x24xf32>
    %48 = vector.broadcast %47 : vector<1x24xf32> to vector<16x24xf32>
    %49 = arith.mulf %46, %48 : vector<16x24xf32>
    %50 = arith.addf %45, %49 : vector<16x24xf32>
    %c20 = arith.constant 20 : index
    %c0_34 = arith.constant 0 : index
    %51 = vector.load %arg15[%c20, %c0_34] : memref<180x24xf32, #tpu.memory_space<vmem>>, vector<16x24xf32>
    %52 = vector.extract_strided_slice %19 {offsets = [5, 0], sizes = [1, 24], strides = [1, 1]} : vector<9x24xf32> to vector<1x24xf32>
    %53 = vector.broadcast %52 : vector<1x24xf32> to vector<16x24xf32>
    %54 = arith.mulf %51, %53 : vector<16x24xf32>
    %55 = arith.addf %50, %54 : vector<16x24xf32>
    %c36 = arith.constant 36 : index
    %c0_35 = arith.constant 0 : index
    %56 = vector.load %arg15[%c36, %c0_35] : memref<180x24xf32, #tpu.memory_space<vmem>>, vector<16x24xf32>
    %57 = vector.extract_strided_slice %19 {offsets = [6, 0], sizes = [1, 24], strides = [1, 1]} : vector<9x24xf32> to vector<1x24xf32>
    %58 = vector.broadcast %57 : vector<1x24xf32> to vector<16x24xf32>
    %59 = arith.mulf %56, %58 : vector<16x24xf32>
    %60 = arith.addf %55, %59 : vector<16x24xf32>
    %c37 = arith.constant 37 : index
    %c0_36 = arith.constant 0 : index
    %61 = vector.load %arg15[%c37, %c0_36] : memref<180x24xf32, #tpu.memory_space<vmem>>, vector<16x24xf32>
    %62 = vector.extract_strided_slice %19 {offsets = [7, 0], sizes = [1, 24], strides = [1, 1]} : vector<9x24xf32> to vector<1x24xf32>
    %63 = vector.broadcast %62 : vector<1x24xf32> to vector<16x24xf32>
    %64 = arith.mulf %61, %63 : vector<16x24xf32>
    %65 = arith.addf %60, %64 : vector<16x24xf32>
    %c38 = arith.constant 38 : index
    %c0_37 = arith.constant 0 : index
    %66 = vector.load %arg15[%c38, %c0_37] : memref<180x24xf32, #tpu.memory_space<vmem>>, vector<16x24xf32>
    %67 = vector.extract_strided_slice %19 {offsets = [8, 0], sizes = [1, 24], strides = [1, 1]} : vector<9x24xf32> to vector<1x24xf32>
    %68 = vector.broadcast %67 : vector<1x24xf32> to vector<16x24xf32>
    %69 = arith.mulf %66, %68 : vector<16x24xf32>
    %70 = arith.addf %65, %69 : vector<16x24xf32>
    %71 = vector.broadcast %20 : vector<1x24xf32> to vector<16x24xf32>
    %72 = arith.mulf %70, %71 : vector<16x24xf32>
    %73 = vector.broadcast %21 : vector<1x24xf32> to vector<16x24xf32>
    %74 = arith.addf %72, %73 : vector<16x24xf32>
    %cst_38 = arith.constant 0.000000e+00 : f32
    %cst_39 = arith.constant 6.000000e+00 : f32
    %75 = vector.broadcast %cst_38 : f32 to vector<16x24xf32>
    %76 = arith.maximumf %75, %74 : vector<16x24xf32>
    %77 = vector.broadcast %cst_39 : f32 to vector<16x24xf32>
    %78 = arith.minimumf %77, %76 : vector<16x24xf32>
    %cst_40 = arith.constant dense<0.000000e+00> : vector<16x4xf32>
    %79 = tpu.matmul %78, %22, %cst_40 {dimension_numbers = #tpu.dot_dimension_numbers<[1], [0], [0], [1], [0, 0, 1, 1], [], []>} : vector<16x24xf32>, vector<24x4xf32>, vector<16x4xf32> -> vector<16x4xf32>
    %80 = vector.broadcast %23 : vector<1x4xf32> to vector<16x4xf32>
    %81 = arith.mulf %79, %80 : vector<16x4xf32>
    %82 = vector.broadcast %24 : vector<1x4xf32> to vector<16x4xf32>
    %83 = arith.addf %81, %82 : vector<16x4xf32>
    %c0_41 = arith.constant 0 : index
    %c0_42 = arith.constant 0 : index
    %c0_43 = arith.constant 0 : index
    %c0_44 = arith.constant 0 : index
    %84 = vector.load %arg13[%c0_41, %c0_42, %c0_43, %c0_44] : memref<1x8x16x4xf32, #tpu.memory_space<vmem>>, vector<1x1x16x4xf32>
    %85 = vector.shape_cast %84 : vector<1x1x16x4xf32> to vector<16x4xf32>
    %86 = arith.addf %83, %85 : vector<16x4xf32>
    %c0_45 = arith.constant 0 : index
    %c0_46 = arith.constant 0 : index
    %c0_47 = arith.constant 0 : index
    %c0_48 = arith.constant 0 : index
    %87 = vector.load %arg14[%c0_45, %c0_46, %c0_47, %c0_48] : memref<1x8x16x4xf32, #tpu.memory_space<vmem>>, vector<1x1x16x4xf32>
    %88 = vector.shape_cast %87 : vector<1x1x16x4xf32> to vector<16x4xf32>
    %89 = vector.shape_cast %86 : vector<16x4xf32> to vector<1x1x16x4xf32>
    tpu.vector_store %arg14[%c0_45, %c0_46, %c0_47, %c0_48], %89 {strides = array<i32>} : memref<1x8x16x4xf32, #tpu.memory_space<vmem>>, vector<1x1x16x4xf32>,
    %cst_49 = arith.constant 0.000000e+00 : f32
    %90 = vector.broadcast %cst_49 : f32 to vector<16x24xf32>
    %c18_50 = arith.constant 18 : index
    %c0_51 = arith.constant 0 : index
    %91 = vector.load %arg15[%c18_50, %c0_51] : memref<180x24xf32, #tpu.memory_space<vmem>>, vector<16x24xf32>
    %92 = vector.extract_strided_slice %19 {offsets = [0, 0], sizes = [1, 24], strides = [1, 1]} : vector<9x24xf32> to vector<1x24xf32>
    %93 = vector.broadcast %92 : vector<1x24xf32> to vector<16x24xf32>
    %94 = arith.mulf %91, %93 : vector<16x24xf32>
    %95 = arith.addf %90, %94 : vector<16x24xf32>
    %c19_52 = arith.constant 19 : index
    %c0_53 = arith.constant 0 : index
    %96 = vector.load %arg15[%c19_52, %c0_53] : memref<180x24xf32, #tpu.memory_space<vmem>>, vector<16x24xf32>
    %97 = vector.extract_strided_slice %19 {offsets = [1, 0], sizes = [1, 24], strides = [1, 1]} : vector<9x24xf32> to vector<1x24xf32>
    %98 = vector.broadcast %97 : vector<1x24xf32> to vector<16x24xf32>
    %99 = arith.mulf %96, %98 : vector<16x24xf32>
    %100 = arith.addf %95, %99 : vector<16x24xf32>
    %c20_54 = arith.constant 20 : index
    %c0_55 = arith.constant 0 : index
    %101 = vector.load %arg15[%c20_54, %c0_55] : memref<180x24xf32, #tpu.memory_space<vmem>>, vector<16x24xf32>
    %102 = vector.extract_strided_slice %19 {offsets = [2, 0], sizes = [1, 24], strides = [1, 1]} : vector<9x24xf32> to vector<1x24xf32>
    %103 = vector.broadcast %102 : vector<1x24xf32> to vector<16x24xf32>
    %104 = arith.mulf %101, %103 : vector<16x24xf32>
    %105 = arith.addf %100, %104 : vector<16x24xf32>
    %c36_56 = arith.constant 36 : index
    %c0_57 = arith.constant 0 : index
    %106 = vector.load %arg15[%c36_56, %c0_57] : memref<180x24xf32, #tpu.memory_space<vmem>>, vector<16x24xf32>
    %107 = vector.extract_strided_slice %19 {offsets = [3, 0], sizes = [1, 24], strides = [1, 1]} : vector<9x24xf32> to vector<1x24xf32>
    %108 = vector.broadcast %107 : vector<1x24xf32> to vector<16x24xf32>
    %109 = arith.mulf %106, %108 : vector<16x24xf32>
    %110 = arith.addf %105, %109 : vector<16x24xf32>
    %c37_58 = arith.constant 37 : index
    %c0_59 = arith.constant 0 : index
    %111 = vector.load %arg15[%c37_58, %c0_59] : memref<180x24xf32, #tpu.memory_space<vmem>>, vector<16x24xf32>
    %112 = vector.extract_strided_slice %19 {offsets = [4, 0], sizes = [1, 24], strides = [1, 1]} : vector<9x24xf32> to vector<1x24xf32>
    %113 = vector.broadcast %112 : vector<1x24xf32> to vector<16x24xf32>
    %114 = arith.mulf %111, %113 : vector<16x24xf32>
    %115 = arith.addf %110, %114 : vector<16x24xf32>
    %c38_60 = arith.constant 38 : index
    %c0_61 = arith.constant 0 : index
    %116 = vector.load %arg15[%c38_60, %c0_61] : memref<180x24xf32, #tpu.memory_space<vmem>>, vector<16x24xf32>
    %117 = vector.extract_strided_slice %19 {offsets = [5, 0], sizes = [1, 24], strides = [1, 1]} : vector<9x24xf32> to vector<1x24xf32>
    %118 = vector.broadcast %117 : vector<1x24xf32> to vector<16x24xf32>
    %119 = arith.mulf %116, %118 : vector<16x24xf32>
    %120 = arith.addf %115, %119 : vector<16x24xf32>
    %c54 = arith.constant 54 : index
    %c0_62 = arith.constant 0 : index
    %121 = vector.load %arg15[%c54, %c0_62] : memref<180x24xf32, #tpu.memory_space<vmem>>, vector<16x24xf32>
    %122 = vector.extract_strided_slice %19 {offsets = [6, 0], sizes = [1, 24], strides = [1, 1]} : vector<9x24xf32> to vector<1x24xf32>
    %123 = vector.broadcast %122 : vector<1x24xf32> to vector<16x24xf32>
    %124 = arith.mulf %121, %123 : vector<16x24xf32>
    %125 = arith.addf %120, %124 : vector<16x24xf32>
    %c55 = arith.constant 55 : index
    %c0_63 = arith.constant 0 : index
    %126 = vector.load %arg15[%c55, %c0_63] : memref<180x24xf32, #tpu.memory_space<vmem>>, vector<16x24xf32>
    %127 = vector.extract_strided_slice %19 {offsets = [7, 0], sizes = [1, 24], strides = [1, 1]} : vector<9x24xf32> to vector<1x24xf32>
    %128 = vector.broadcast %127 : vector<1x24xf32> to vector<16x24xf32>
    %129 = arith.mulf %126, %128 : vector<16x24xf32>
    %130 = arith.addf %125, %129 : vector<16x24xf32>
    %c56 = arith.constant 56 : index
    %c0_64 = arith.constant 0 : index
    %131 = vector.load %arg15[%c56, %c0_64] : memref<180x24xf32, #tpu.memory_space<vmem>>, vector<16x24xf32>
    %132 = vector.extract_strided_slice %19 {offsets = [8, 0], sizes = [1, 24], strides = [1, 1]} : vector<9x24xf32> to vector<1x24xf32>
    %133 = vector.broadcast %132 : vector<1x24xf32> to vector<16x24xf32>
    %134 = arith.mulf %131, %133 : vector<16x24xf32>
    %135 = arith.addf %130, %134 : vector<16x24xf32>
    %136 = vector.broadcast %20 : vector<1x24xf32> to vector<16x24xf32>
    %137 = arith.mulf %135, %136 : vector<16x24xf32>
    %138 = vector.broadcast %21 : vector<1x24xf32> to vector<16x24xf32>
    %139 = arith.addf %137, %138 : vector<16x24xf32>
    %cst_65 = arith.constant 0.000000e+00 : f32
    %cst_66 = arith.constant 6.000000e+00 : f32
    %140 = vector.broadcast %cst_65 : f32 to vector<16x24xf32>
    %141 = arith.maximumf %140, %139 : vector<16x24xf32>
    %142 = vector.broadcast %cst_66 : f32 to vector<16x24xf32>
    %143 = arith.minimumf %142, %141 : vector<16x24xf32>
    %cst_67 = arith.constant dense<0.000000e+00> : vector<16x4xf32>
    %144 = tpu.matmul %143, %22, %cst_67 {dimension_numbers = #tpu.dot_dimension_numbers<[1], [0], [0], [1], [0, 0, 1, 1], [], []>} : vector<16x24xf32>, vector<24x4xf32>, vector<16x4xf32> -> vector<16x4xf32>
    %145 = vector.broadcast %23 : vector<1x4xf32> to vector<16x4xf32>
    %146 = arith.mulf %144, %145 : vector<16x4xf32>
    %147 = vector.broadcast %24 : vector<1x4xf32> to vector<16x4xf32>
    %148 = arith.addf %146, %147 : vector<16x4xf32>
    %c0_68 = arith.constant 0 : index
    %c1_69 = arith.constant 1 : index
    %c0_70 = arith.constant 0 : index
    %c0_71 = arith.constant 0 : index
    %149 = vector.load %arg13[%c0_68, %c1_69, %c0_70, %c0_71] : memref<1x8x16x4xf32, #tpu.memory_space<vmem>>, vector<1x1x16x4xf32>
    %150 = vector.shape_cast %149 : vector<1x1x16x4xf32> to vector<16x4xf32>
    %151 = arith.addf %148, %150 : vector<16x4xf32>
    %c0_72 = arith.constant 0 : index
    %c1_73 = arith.constant 1 : index
    %c0_74 = arith.constant 0 : index
    %c0_75 = arith.constant 0 : index
    %152 = vector.load %arg14[%c0_72, %c1_73, %c0_74, %c0_75] : memref<1x8x16x4xf32, #tpu.memory_space<vmem>>, vector<1x1x16x4xf32>
    %153 = vector.shape_cast %152 : vector<1x1x16x4xf32> to vector<16x4xf32>
    %154 = vector.shape_cast %151 : vector<16x4xf32> to vector<1x1x16x4xf32>
    tpu.vector_store %arg14[%c0_72, %c1_73, %c0_74, %c0_75], %154 {strides = array<i32>} : memref<1x8x16x4xf32, #tpu.memory_space<vmem>>, vector<1x1x16x4xf32>,
    %cst_76 = arith.constant 0.000000e+00 : f32
    %155 = vector.broadcast %cst_76 : f32 to vector<16x24xf32>
    %c36_77 = arith.constant 36 : index
    %c0_78 = arith.constant 0 : index
    %156 = vector.load %arg15[%c36_77, %c0_78] : memref<180x24xf32, #tpu.memory_space<vmem>>, vector<16x24xf32>
    %157 = vector.extract_strided_slice %19 {offsets = [0, 0], sizes = [1, 24], strides = [1, 1]} : vector<9x24xf32> to vector<1x24xf32>
    %158 = vector.broadcast %157 : vector<1x24xf32> to vector<16x24xf32>
    %159 = arith.mulf %156, %158 : vector<16x24xf32>
    %160 = arith.addf %155, %159 : vector<16x24xf32>
    %c37_79 = arith.constant 37 : index
    %c0_80 = arith.constant 0 : index
    %161 = vector.load %arg15[%c37_79, %c0_80] : memref<180x24xf32, #tpu.memory_space<vmem>>, vector<16x24xf32>
    %162 = vector.extract_strided_slice %19 {offsets = [1, 0], sizes = [1, 24], strides = [1, 1]} : vector<9x24xf32> to vector<1x24xf32>
    %163 = vector.broadcast %162 : vector<1x24xf32> to vector<16x24xf32>
    %164 = arith.mulf %161, %163 : vector<16x24xf32>
    %165 = arith.addf %160, %164 : vector<16x24xf32>
    %c38_81 = arith.constant 38 : index
    %c0_82 = arith.constant 0 : index
    %166 = vector.load %arg15[%c38_81, %c0_82] : memref<180x24xf32, #tpu.memory_space<vmem>>, vector<16x24xf32>
    %167 = vector.extract_strided_slice %19 {offsets = [2, 0], sizes = [1, 24], strides = [1, 1]} : vector<9x24xf32> to vector<1x24xf32>
    %168 = vector.broadcast %167 : vector<1x24xf32> to vector<16x24xf32>
    %169 = arith.mulf %166, %168 : vector<16x24xf32>
    %170 = arith.addf %165, %169 : vector<16x24xf32>
    %c54_83 = arith.constant 54 : index
    %c0_84 = arith.constant 0 : index
    %171 = vector.load %arg15[%c54_83, %c0_84] : memref<180x24xf32, #tpu.memory_space<vmem>>, vector<16x24xf32>
    %172 = vector.extract_strided_slice %19 {offsets = [3, 0], sizes = [1, 24], strides = [1, 1]} : vector<9x24xf32> to vector<1x24xf32>
    %173 = vector.broadcast %172 : vector<1x24xf32> to vector<16x24xf32>
    %174 = arith.mulf %171, %173 : vector<16x24xf32>
    %175 = arith.addf %170, %174 : vector<16x24xf32>
    %c55_85 = arith.constant 55 : index
    %c0_86 = arith.constant 0 : index
    %176 = vector.load %arg15[%c55_85, %c0_86] : memref<180x24xf32, #tpu.memory_space<vmem>>, vector<16x24xf32>
    %177 = vector.extract_strided_slice %19 {offsets = [4, 0], sizes = [1, 24], strides = [1, 1]} : vector<9x24xf32> to vector<1x24xf32>
    %178 = vector.broadcast %177 : vector<1x24xf32> to vector<16x24xf32>
    %179 = arith.mulf %176, %178 : vector<16x24xf32>
    %180 = arith.addf %175, %179 : vector<16x24xf32>
    %c56_87 = arith.constant 56 : index
    %c0_88 = arith.constant 0 : index
    %181 = vector.load %arg15[%c56_87, %c0_88] : memref<180x24xf32, #tpu.memory_space<vmem>>, vector<16x24xf32>
    %182 = vector.extract_strided_slice %19 {offsets = [5, 0], sizes = [1, 24], strides = [1, 1]} : vector<9x24xf32> to vector<1x24xf32>
    %183 = vector.broadcast %182 : vector<1x24xf32> to vector<16x24xf32>
    %184 = arith.mulf %181, %183 : vector<16x24xf32>
    %185 = arith.addf %180, %184 : vector<16x24xf32>
    %c72 = arith.constant 72 : index
    %c0_89 = arith.constant 0 : index
    %186 = vector.load %arg15[%c72, %c0_89] : memref<180x24xf32, #tpu.memory_space<vmem>>, vector<16x24xf32>
    %187 = vector.extract_strided_slice %19 {offsets = [6, 0], sizes = [1, 24], strides = [1, 1]} : vector<9x24xf32> to vector<1x24xf32>
    %188 = vector.broadcast %187 : vector<1x24xf32> to vector<16x24xf32>
    %189 = arith.mulf %186, %188 : vector<16x24xf32>
    %190 = arith.addf %185, %189 : vector<16x24xf32>
    %c73 = arith.constant 73 : index
    %c0_90 = arith.constant 0 : index
    %191 = vector.load %arg15[%c73, %c0_90] : memref<180x24xf32, #tpu.memory_space<vmem>>, vector<16x24xf32>
    %192 = vector.extract_strided_slice %19 {offsets = [7, 0], sizes = [1, 24], strides = [1, 1]} : vector<9x24xf32> to vector<1x24xf32>
    %193 = vector.broadcast %192 : vector<1x24xf32> to vector<16x24xf32>
    %194 = arith.mulf %191, %193 : vector<16x24xf32>
    %195 = arith.addf %190, %194 : vector<16x24xf32>
    %c74 = arith.constant 74 : index
    %c0_91 = arith.constant 0 : index
    %196 = vector.load %arg15[%c74, %c0_91] : memref<180x24xf32, #tpu.memory_space<vmem>>, vector<16x24xf32>
    %197 = vector.extract_strided_slice %19 {offsets = [8, 0], sizes = [1, 24], strides = [1, 1]} : vector<9x24xf32> to vector<1x24xf32>
    %198 = vector.broadcast %197 : vector<1x24xf32> to vector<16x24xf32>
    %199 = arith.mulf %196, %198 : vector<16x24xf32>
    %200 = arith.addf %195, %199 : vector<16x24xf32>
    %201 = vector.broadcast %20 : vector<1x24xf32> to vector<16x24xf32>
    %202 = arith.mulf %200, %201 : vector<16x24xf32>
    %203 = vector.broadcast %21 : vector<1x24xf32> to vector<16x24xf32>
    %204 = arith.addf %202, %203 : vector<16x24xf32>
    %cst_92 = arith.constant 0.000000e+00 : f32
    %cst_93 = arith.constant 6.000000e+00 : f32
    %205 = vector.broadcast %cst_92 : f32 to vector<16x24xf32>
    %206 = arith.maximumf %205, %204 : vector<16x24xf32>
    %207 = vector.broadcast %cst_93 : f32 to vector<16x24xf32>
    %208 = arith.minimumf %207, %206 : vector<16x24xf32>
    %cst_94 = arith.constant dense<0.000000e+00> : vector<16x4xf32>
    %209 = tpu.matmul %208, %22, %cst_94 {dimension_numbers = #tpu.dot_dimension_numbers<[1], [0], [0], [1], [0, 0, 1, 1], [], []>} : vector<16x24xf32>, vector<24x4xf32>, vector<16x4xf32> -> vector<16x4xf32>
    %210 = vector.broadcast %23 : vector<1x4xf32> to vector<16x4xf32>
    %211 = arith.mulf %209, %210 : vector<16x4xf32>
    %212 = vector.broadcast %24 : vector<1x4xf32> to vector<16x4xf32>
    %213 = arith.addf %211, %212 : vector<16x4xf32>
    %c0_95 = arith.constant 0 : index
    %c2_96 = arith.constant 2 : index
    %c0_97 = arith.constant 0 : index
    %c0_98 = arith.constant 0 : index
    %214 = vector.load %arg13[%c0_95, %c2_96, %c0_97, %c0_98] : memref<1x8x16x4xf32, #tpu.memory_space<vmem>>, vector<1x1x16x4xf32>
    %215 = vector.shape_cast %214 : vector<1x1x16x4xf32> to vector<16x4xf32>
    %216 = arith.addf %213, %215 : vector<16x4xf32>
    %c0_99 = arith.constant 0 : index
    %c2_100 = arith.constant 2 : index
    %c0_101 = arith.constant 0 : index
    %c0_102 = arith.constant 0 : index
    %217 = vector.load %arg14[%c0_99, %c2_100, %c0_101, %c0_102] : memref<1x8x16x4xf32, #tpu.memory_space<vmem>>, vector<1x1x16x4xf32>
    %218 = vector.shape_cast %217 : vector<1x1x16x4xf32> to vector<16x4xf32>
    %219 = vector.shape_cast %216 : vector<16x4xf32> to vector<1x1x16x4xf32>
    tpu.vector_store %arg14[%c0_99, %c2_100, %c0_101, %c0_102], %219 {strides = array<i32>} : memref<1x8x16x4xf32, #tpu.memory_space<vmem>>, vector<1x1x16x4xf32>,
    %cst_103 = arith.constant 0.000000e+00 : f32
    %220 = vector.broadcast %cst_103 : f32 to vector<16x24xf32>
    %c54_104 = arith.constant 54 : index
    %c0_105 = arith.constant 0 : index
    %221 = vector.load %arg15[%c54_104, %c0_105] : memref<180x24xf32, #tpu.memory_space<vmem>>, vector<16x24xf32>
    %222 = vector.extract_strided_slice %19 {offsets = [0, 0], sizes = [1, 24], strides = [1, 1]} : vector<9x24xf32> to vector<1x24xf32>
    %223 = vector.broadcast %222 : vector<1x24xf32> to vector<16x24xf32>
    %224 = arith.mulf %221, %223 : vector<16x24xf32>
    %225 = arith.addf %220, %224 : vector<16x24xf32>
    %c55_106 = arith.constant 55 : index
    %c0_107 = arith.constant 0 : index
    %226 = vector.load %arg15[%c55_106, %c0_107] : memref<180x24xf32, #tpu.memory_space<vmem>>, vector<16x24xf32>
    %227 = vector.extract_strided_slice %19 {offsets = [1, 0], sizes = [1, 24], strides = [1, 1]} : vector<9x24xf32> to vector<1x24xf32>
    %228 = vector.broadcast %227 : vector<1x24xf32> to vector<16x24xf32>
    %229 = arith.mulf %226, %228 : vector<16x24xf32>
    %230 = arith.addf %225, %229 : vector<16x24xf32>
    %c56_108 = arith.constant 56 : index
    %c0_109 = arith.constant 0 : index
    %231 = vector.load %arg15[%c56_108, %c0_109] : memref<180x24xf32, #tpu.memory_space<vmem>>, vector<16x24xf32>
    %232 = vector.extract_strided_slice %19 {offsets = [2, 0], sizes = [1, 24], strides = [1, 1]} : vector<9x24xf32> to vector<1x24xf32>
    %233 = vector.broadcast %232 : vector<1x24xf32> to vector<16x24xf32>
    %234 = arith.mulf %231, %233 : vector<16x24xf32>
    %235 = arith.addf %230, %234 : vector<16x24xf32>
    %c72_110 = arith.constant 72 : index
    %c0_111 = arith.constant 0 : index
    %236 = vector.load %arg15[%c72_110, %c0_111] : memref<180x24xf32, #tpu.memory_space<vmem>>, vector<16x24xf32>
    %237 = vector.extract_strided_slice %19 {offsets = [3, 0], sizes = [1, 24], strides = [1, 1]} : vector<9x24xf32> to vector<1x24xf32>
    %238 = vector.broadcast %237 : vector<1x24xf32> to vector<16x24xf32>
    %239 = arith.mulf %236, %238 : vector<16x24xf32>
    %240 = arith.addf %235, %239 : vector<16x24xf32>
    %c73_112 = arith.constant 73 : index
    %c0_113 = arith.constant 0 : index
    %241 = vector.load %arg15[%c73_112, %c0_113] : memref<180x24xf32, #tpu.memory_space<vmem>>, vector<16x24xf32>
    %242 = vector.extract_strided_slice %19 {offsets = [4, 0], sizes = [1, 24], strides = [1, 1]} : vector<9x24xf32> to vector<1x24xf32>
    %243 = vector.broadcast %242 : vector<1x24xf32> to vector<16x24xf32>
    %244 = arith.mulf %241, %243 : vector<16x24xf32>
    %245 = arith.addf %240, %244 : vector<16x24xf32>
    %c74_114 = arith.constant 74 : index
    %c0_115 = arith.constant 0 : index
    %246 = vector.load %arg15[%c74_114, %c0_115] : memref<180x24xf32, #tpu.memory_space<vmem>>, vector<16x24xf32>
    %247 = vector.extract_strided_slice %19 {offsets = [5, 0], sizes = [1, 24], strides = [1, 1]} : vector<9x24xf32> to vector<1x24xf32>
    %248 = vector.broadcast %247 : vector<1x24xf32> to vector<16x24xf32>
    %249 = arith.mulf %246, %248 : vector<16x24xf32>
    %250 = arith.addf %245, %249 : vector<16x24xf32>
    %c90 = arith.constant 90 : index
    %c0_116 = arith.constant 0 : index
    %251 = vector.load %arg15[%c90, %c0_116] : memref<180x24xf32, #tpu.memory_space<vmem>>, vector<16x24xf32>
    %252 = vector.extract_strided_slice %19 {offsets = [6, 0], sizes = [1, 24], strides = [1, 1]} : vector<9x24xf32> to vector<1x24xf32>
    %253 = vector.broadcast %252 : vector<1x24xf32> to vector<16x24xf32>
    %254 = arith.mulf %251, %253 : vector<16x24xf32>
    %255 = arith.addf %250, %254 : vector<16x24xf32>
    %c91 = arith.constant 91 : index
    %c0_117 = arith.constant 0 : index
    %256 = vector.load %arg15[%c91, %c0_117] : memref<180x24xf32, #tpu.memory_space<vmem>>, vector<16x24xf32>
    %257 = vector.extract_strided_slice %19 {offsets = [7, 0], sizes = [1, 24], strides = [1, 1]} : vector<9x24xf32> to vector<1x24xf32>
    %258 = vector.broadcast %257 : vector<1x24xf32> to vector<16x24xf32>
    %259 = arith.mulf %256, %258 : vector<16x24xf32>
    %260 = arith.addf %255, %259 : vector<16x24xf32>
    %c92 = arith.constant 92 : index
    %c0_118 = arith.constant 0 : index
    %261 = vector.load %arg15[%c92, %c0_118] : memref<180x24xf32, #tpu.memory_space<vmem>>, vector<16x24xf32>
    %262 = vector.extract_strided_slice %19 {offsets = [8, 0], sizes = [1, 24], strides = [1, 1]} : vector<9x24xf32> to vector<1x24xf32>
    %263 = vector.broadcast %262 : vector<1x24xf32> to vector<16x24xf32>
    %264 = arith.mulf %261, %263 : vector<16x24xf32>
    %265 = arith.addf %260, %264 : vector<16x24xf32>
    %266 = vector.broadcast %20 : vector<1x24xf32> to vector<16x24xf32>
    %267 = arith.mulf %265, %266 : vector<16x24xf32>
    %268 = vector.broadcast %21 : vector<1x24xf32> to vector<16x24xf32>
    %269 = arith.addf %267, %268 : vector<16x24xf32>
    %cst_119 = arith.constant 0.000000e+00 : f32
    %cst_120 = arith.constant 6.000000e+00 : f32
    %270 = vector.broadcast %cst_119 : f32 to vector<16x24xf32>
    %271 = arith.maximumf %270, %269 : vector<16x24xf32>
    %272 = vector.broadcast %cst_120 : f32 to vector<16x24xf32>
    %273 = arith.minimumf %272, %271 : vector<16x24xf32>
    %cst_121 = arith.constant dense<0.000000e+00> : vector<16x4xf32>
    %274 = tpu.matmul %273, %22, %cst_121 {dimension_numbers = #tpu.dot_dimension_numbers<[1], [0], [0], [1], [0, 0, 1, 1], [], []>} : vector<16x24xf32>, vector<24x4xf32>, vector<16x4xf32> -> vector<16x4xf32>
    %275 = vector.broadcast %23 : vector<1x4xf32> to vector<16x4xf32>
    %276 = arith.mulf %274, %275 : vector<16x4xf32>
    %277 = vector.broadcast %24 : vector<1x4xf32> to vector<16x4xf32>
    %278 = arith.addf %276, %277 : vector<16x4xf32>
    %c0_122 = arith.constant 0 : index
    %c3 = arith.constant 3 : index
    %c0_123 = arith.constant 0 : index
    %c0_124 = arith.constant 0 : index
    %279 = vector.load %arg13[%c0_122, %c3, %c0_123, %c0_124] : memref<1x8x16x4xf32, #tpu.memory_space<vmem>>, vector<1x1x16x4xf32>
    %280 = vector.shape_cast %279 : vector<1x1x16x4xf32> to vector<16x4xf32>
    %281 = arith.addf %278, %280 : vector<16x4xf32>
    %c0_125 = arith.constant 0 : index
    %c3_126 = arith.constant 3 : index
    %c0_127 = arith.constant 0 : index
    %c0_128 = arith.constant 0 : index
    %282 = vector.load %arg14[%c0_125, %c3_126, %c0_127, %c0_128] : memref<1x8x16x4xf32, #tpu.memory_space<vmem>>, vector<1x1x16x4xf32>
    %283 = vector.shape_cast %282 : vector<1x1x16x4xf32> to vector<16x4xf32>
    %284 = vector.shape_cast %281 : vector<16x4xf32> to vector<1x1x16x4xf32>
    tpu.vector_store %arg14[%c0_125, %c3_126, %c0_127, %c0_128], %284 {strides = array<i32>} : memref<1x8x16x4xf32, #tpu.memory_space<vmem>>, vector<1x1x16x4xf32>,
    %cst_129 = arith.constant 0.000000e+00 : f32
    %285 = vector.broadcast %cst_129 : f32 to vector<16x24xf32>
    %c72_130 = arith.constant 72 : index
    %c0_131 = arith.constant 0 : index
    %286 = vector.load %arg15[%c72_130, %c0_131] : memref<180x24xf32, #tpu.memory_space<vmem>>, vector<16x24xf32>
    %287 = vector.extract_strided_slice %19 {offsets = [0, 0], sizes = [1, 24], strides = [1, 1]} : vector<9x24xf32> to vector<1x24xf32>
    %288 = vector.broadcast %287 : vector<1x24xf32> to vector<16x24xf32>
    %289 = arith.mulf %286, %288 : vector<16x24xf32>
    %290 = arith.addf %285, %289 : vector<16x24xf32>
    %c73_132 = arith.constant 73 : index
    %c0_133 = arith.constant 0 : index
    %291 = vector.load %arg15[%c73_132, %c0_133] : memref<180x24xf32, #tpu.memory_space<vmem>>, vector<16x24xf32>
    %292 = vector.extract_strided_slice %19 {offsets = [1, 0], sizes = [1, 24], strides = [1, 1]} : vector<9x24xf32> to vector<1x24xf32>
    %293 = vector.broadcast %292 : vector<1x24xf32> to vector<16x24xf32>
    %294 = arith.mulf %291, %293 : vector<16x24xf32>
    %295 = arith.addf %290, %294 : vector<16x24xf32>
    %c74_134 = arith.constant 74 : index
    %c0_135 = arith.constant 0 : index
    %296 = vector.load %arg15[%c74_134, %c0_135] : memref<180x24xf32, #tpu.memory_space<vmem>>, vector<16x24xf32>
    %297 = vector.extract_strided_slice %19 {offsets = [2, 0], sizes = [1, 24], strides = [1, 1]} : vector<9x24xf32> to vector<1x24xf32>
    %298 = vector.broadcast %297 : vector<1x24xf32> to vector<16x24xf32>
    %299 = arith.mulf %296, %298 : vector<16x24xf32>
    %300 = arith.addf %295, %299 : vector<16x24xf32>
    %c90_136 = arith.constant 90 : index
    %c0_137 = arith.constant 0 : index
    %301 = vector.load %arg15[%c90_136, %c0_137] : memref<180x24xf32, #tpu.memory_space<vmem>>, vector<16x24xf32>
    %302 = vector.extract_strided_slice %19 {offsets = [3, 0], sizes = [1, 24], strides = [1, 1]} : vector<9x24xf32> to vector<1x24xf32>
    %303 = vector.broadcast %302 : vector<1x24xf32> to vector<16x24xf32>
    %304 = arith.mulf %301, %303 : vector<16x24xf32>
    %305 = arith.addf %300, %304 : vector<16x24xf32>
    %c91_138 = arith.constant 91 : index
    %c0_139 = arith.constant 0 : index
    %306 = vector.load %arg15[%c91_138, %c0_139] : memref<180x24xf32, #tpu.memory_space<vmem>>, vector<16x24xf32>
    %307 = vector.extract_strided_slice %19 {offsets = [4, 0], sizes = [1, 24], strides = [1, 1]} : vector<9x24xf32> to vector<1x24xf32>
    %308 = vector.broadcast %307 : vector<1x24xf32> to vector<16x24xf32>
    %309 = arith.mulf %306, %308 : vector<16x24xf32>
    %310 = arith.addf %305, %309 : vector<16x24xf32>
    %c92_140 = arith.constant 92 : index
    %c0_141 = arith.constant 0 : index
    %311 = vector.load %arg15[%c92_140, %c0_141] : memref<180x24xf32, #tpu.memory_space<vmem>>, vector<16x24xf32>
    %312 = vector.extract_strided_slice %19 {offsets = [5, 0], sizes = [1, 24], strides = [1, 1]} : vector<9x24xf32> to vector<1x24xf32>
    %313 = vector.broadcast %312 : vector<1x24xf32> to vector<16x24xf32>
    %314 = arith.mulf %311, %313 : vector<16x24xf32>
    %315 = arith.addf %310, %314 : vector<16x24xf32>
    %c108 = arith.constant 108 : index
    %c0_142 = arith.constant 0 : index
    %316 = vector.load %arg15[%c108, %c0_142] : memref<180x24xf32, #tpu.memory_space<vmem>>, vector<16x24xf32>
    %317 = vector.extract_strided_slice %19 {offsets = [6, 0], sizes = [1, 24], strides = [1, 1]} : vector<9x24xf32> to vector<1x24xf32>
    %318 = vector.broadcast %317 : vector<1x24xf32> to vector<16x24xf32>
    %319 = arith.mulf %316, %318 : vector<16x24xf32>
    %320 = arith.addf %315, %319 : vector<16x24xf32>
    %c109 = arith.constant 109 : index
    %c0_143 = arith.constant 0 : index
    %321 = vector.load %arg15[%c109, %c0_143] : memref<180x24xf32, #tpu.memory_space<vmem>>, vector<16x24xf32>
    %322 = vector.extract_strided_slice %19 {offsets = [7, 0], sizes = [1, 24], strides = [1, 1]} : vector<9x24xf32> to vector<1x24xf32>
    %323 = vector.broadcast %322 : vector<1x24xf32> to vector<16x24xf32>
    %324 = arith.mulf %321, %323 : vector<16x24xf32>
    %325 = arith.addf %320, %324 : vector<16x24xf32>
    %c110 = arith.constant 110 : index
    %c0_144 = arith.constant 0 : index
    %326 = vector.load %arg15[%c110, %c0_144] : memref<180x24xf32, #tpu.memory_space<vmem>>, vector<16x24xf32>
    %327 = vector.extract_strided_slice %19 {offsets = [8, 0], sizes = [1, 24], strides = [1, 1]} : vector<9x24xf32> to vector<1x24xf32>
    %328 = vector.broadcast %327 : vector<1x24xf32> to vector<16x24xf32>
    %329 = arith.mulf %326, %328 : vector<16x24xf32>
    %330 = arith.addf %325, %329 : vector<16x24xf32>
    %331 = vector.broadcast %20 : vector<1x24xf32> to vector<16x24xf32>
    %332 = arith.mulf %330, %331 : vector<16x24xf32>
    %333 = vector.broadcast %21 : vector<1x24xf32> to vector<16x24xf32>
    %334 = arith.addf %332, %333 : vector<16x24xf32>
    %cst_145 = arith.constant 0.000000e+00 : f32
    %cst_146 = arith.constant 6.000000e+00 : f32
    %335 = vector.broadcast %cst_145 : f32 to vector<16x24xf32>
    %336 = arith.maximumf %335, %334 : vector<16x24xf32>
    %337 = vector.broadcast %cst_146 : f32 to vector<16x24xf32>
    %338 = arith.minimumf %337, %336 : vector<16x24xf32>
    %cst_147 = arith.constant dense<0.000000e+00> : vector<16x4xf32>
    %339 = tpu.matmul %338, %22, %cst_147 {dimension_numbers = #tpu.dot_dimension_numbers<[1], [0], [0], [1], [0, 0, 1, 1], [], []>} : vector<16x24xf32>, vector<24x4xf32>, vector<16x4xf32> -> vector<16x4xf32>
    %340 = vector.broadcast %23 : vector<1x4xf32> to vector<16x4xf32>
    %341 = arith.mulf %339, %340 : vector<16x4xf32>
    %342 = vector.broadcast %24 : vector<1x4xf32> to vector<16x4xf32>
    %343 = arith.addf %341, %342 : vector<16x4xf32>
    %c0_148 = arith.constant 0 : index
    %c4 = arith.constant 4 : index
    %c0_149 = arith.constant 0 : index
    %c0_150 = arith.constant 0 : index
    %344 = vector.load %arg13[%c0_148, %c4, %c0_149, %c0_150] : memref<1x8x16x4xf32, #tpu.memory_space<vmem>>, vector<1x1x16x4xf32>
    %345 = vector.shape_cast %344 : vector<1x1x16x4xf32> to vector<16x4xf32>
    %346 = arith.addf %343, %345 : vector<16x4xf32>
    %c0_151 = arith.constant 0 : index
    %c4_152 = arith.constant 4 : index
    %c0_153 = arith.constant 0 : index
    %c0_154 = arith.constant 0 : index
    %347 = vector.load %arg14[%c0_151, %c4_152, %c0_153, %c0_154] : memref<1x8x16x4xf32, #tpu.memory_space<vmem>>, vector<1x1x16x4xf32>
    %348 = vector.shape_cast %347 : vector<1x1x16x4xf32> to vector<16x4xf32>
    %349 = vector.shape_cast %346 : vector<16x4xf32> to vector<1x1x16x4xf32>
    tpu.vector_store %arg14[%c0_151, %c4_152, %c0_153, %c0_154], %349 {strides = array<i32>} : memref<1x8x16x4xf32, #tpu.memory_space<vmem>>, vector<1x1x16x4xf32>,
    %cst_155 = arith.constant 0.000000e+00 : f32
    %350 = vector.broadcast %cst_155 : f32 to vector<16x24xf32>
    %c90_156 = arith.constant 90 : index
    %c0_157 = arith.constant 0 : index
    %351 = vector.load %arg15[%c90_156, %c0_157] : memref<180x24xf32, #tpu.memory_space<vmem>>, vector<16x24xf32>
    %352 = vector.extract_strided_slice %19 {offsets = [0, 0], sizes = [1, 24], strides = [1, 1]} : vector<9x24xf32> to vector<1x24xf32>
    %353 = vector.broadcast %352 : vector<1x24xf32> to vector<16x24xf32>
    %354 = arith.mulf %351, %353 : vector<16x24xf32>
    %355 = arith.addf %350, %354 : vector<16x24xf32>
    %c91_158 = arith.constant 91 : index
    %c0_159 = arith.constant 0 : index
    %356 = vector.load %arg15[%c91_158, %c0_159] : memref<180x24xf32, #tpu.memory_space<vmem>>, vector<16x24xf32>
    %357 = vector.extract_strided_slice %19 {offsets = [1, 0], sizes = [1, 24], strides = [1, 1]} : vector<9x24xf32> to vector<1x24xf32>
    %358 = vector.broadcast %357 : vector<1x24xf32> to vector<16x24xf32>
    %359 = arith.mulf %356, %358 : vector<16x24xf32>
    %360 = arith.addf %355, %359 : vector<16x24xf32>
    %c92_160 = arith.constant 92 : index
    %c0_161 = arith.constant 0 : index
    %361 = vector.load %arg15[%c92_160, %c0_161] : memref<180x24xf32, #tpu.memory_space<vmem>>, vector<16x24xf32>
    %362 = vector.extract_strided_slice %19 {offsets = [2, 0], sizes = [1, 24], strides = [1, 1]} : vector<9x24xf32> to vector<1x24xf32>
    %363 = vector.broadcast %362 : vector<1x24xf32> to vector<16x24xf32>
    %364 = arith.mulf %361, %363 : vector<16x24xf32>
    %365 = arith.addf %360, %364 : vector<16x24xf32>
    %c108_162 = arith.constant 108 : index
    %c0_163 = arith.constant 0 : index
    %366 = vector.load %arg15[%c108_162, %c0_163] : memref<180x24xf32, #tpu.memory_space<vmem>>, vector<16x24xf32>
    %367 = vector.extract_strided_slice %19 {offsets = [3, 0], sizes = [1, 24], strides = [1, 1]} : vector<9x24xf32> to vector<1x24xf32>
    %368 = vector.broadcast %367 : vector<1x24xf32> to vector<16x24xf32>
    %369 = arith.mulf %366, %368 : vector<16x24xf32>
    %370 = arith.addf %365, %369 : vector<16x24xf32>
    %c109_164 = arith.constant 109 : index
    %c0_165 = arith.constant 0 : index
    %371 = vector.load %arg15[%c109_164, %c0_165] : memref<180x24xf32, #tpu.memory_space<vmem>>, vector<16x24xf32>
    %372 = vector.extract_strided_slice %19 {offsets = [4, 0], sizes = [1, 24], strides = [1, 1]} : vector<9x24xf32> to vector<1x24xf32>
    %373 = vector.broadcast %372 : vector<1x24xf32> to vector<16x24xf32>
    %374 = arith.mulf %371, %373 : vector<16x24xf32>
    %375 = arith.addf %370, %374 : vector<16x24xf32>
    %c110_166 = arith.constant 110 : index
    %c0_167 = arith.constant 0 : index
    %376 = vector.load %arg15[%c110_166, %c0_167] : memref<180x24xf32, #tpu.memory_space<vmem>>, vector<16x24xf32>
    %377 = vector.extract_strided_slice %19 {offsets = [5, 0], sizes = [1, 24], strides = [1, 1]} : vector<9x24xf32> to vector<1x24xf32>
    %378 = vector.broadcast %377 : vector<1x24xf32> to vector<16x24xf32>
    %379 = arith.mulf %376, %378 : vector<16x24xf32>
    %380 = arith.addf %375, %379 : vector<16x24xf32>
    %c126 = arith.constant 126 : index
    %c0_168 = arith.constant 0 : index
    %381 = vector.load %arg15[%c126, %c0_168] : memref<180x24xf32, #tpu.memory_space<vmem>>, vector<16x24xf32>
    %382 = vector.extract_strided_slice %19 {offsets = [6, 0], sizes = [1, 24], strides = [1, 1]} : vector<9x24xf32> to vector<1x24xf32>
    %383 = vector.broadcast %382 : vector<1x24xf32> to vector<16x24xf32>
    %384 = arith.mulf %381, %383 : vector<16x24xf32>
    %385 = arith.addf %380, %384 : vector<16x24xf32>
    %c127 = arith.constant 127 : index
    %c0_169 = arith.constant 0 : index
    %386 = vector.load %arg15[%c127, %c0_169] : memref<180x24xf32, #tpu.memory_space<vmem>>, vector<16x24xf32>
    %387 = vector.extract_strided_slice %19 {offsets = [7, 0], sizes = [1, 24], strides = [1, 1]} : vector<9x24xf32> to vector<1x24xf32>
    %388 = vector.broadcast %387 : vector<1x24xf32> to vector<16x24xf32>
    %389 = arith.mulf %386, %388 : vector<16x24xf32>
    %390 = arith.addf %385, %389 : vector<16x24xf32>
    %c128 = arith.constant 128 : index
    %c0_170 = arith.constant 0 : index
    %391 = vector.load %arg15[%c128, %c0_170] : memref<180x24xf32, #tpu.memory_space<vmem>>, vector<16x24xf32>
    %392 = vector.extract_strided_slice %19 {offsets = [8, 0], sizes = [1, 24], strides = [1, 1]} : vector<9x24xf32> to vector<1x24xf32>
    %393 = vector.broadcast %392 : vector<1x24xf32> to vector<16x24xf32>
    %394 = arith.mulf %391, %393 : vector<16x24xf32>
    %395 = arith.addf %390, %394 : vector<16x24xf32>
    %396 = vector.broadcast %20 : vector<1x24xf32> to vector<16x24xf32>
    %397 = arith.mulf %395, %396 : vector<16x24xf32>
    %398 = vector.broadcast %21 : vector<1x24xf32> to vector<16x24xf32>
    %399 = arith.addf %397, %398 : vector<16x24xf32>
    %cst_171 = arith.constant 0.000000e+00 : f32
    %cst_172 = arith.constant 6.000000e+00 : f32
    %400 = vector.broadcast %cst_171 : f32 to vector<16x24xf32>
    %401 = arith.maximumf %400, %399 : vector<16x24xf32>
    %402 = vector.broadcast %cst_172 : f32 to vector<16x24xf32>
    %403 = arith.minimumf %402, %401 : vector<16x24xf32>
    %cst_173 = arith.constant dense<0.000000e+00> : vector<16x4xf32>
    %404 = tpu.matmul %403, %22, %cst_173 {dimension_numbers = #tpu.dot_dimension_numbers<[1], [0], [0], [1], [0, 0, 1, 1], [], []>} : vector<16x24xf32>, vector<24x4xf32>, vector<16x4xf32> -> vector<16x4xf32>
    %405 = vector.broadcast %23 : vector<1x4xf32> to vector<16x4xf32>
    %406 = arith.mulf %404, %405 : vector<16x4xf32>
    %407 = vector.broadcast %24 : vector<1x4xf32> to vector<16x4xf32>
    %408 = arith.addf %406, %407 : vector<16x4xf32>
    %c0_174 = arith.constant 0 : index
    %c5 = arith.constant 5 : index
    %c0_175 = arith.constant 0 : index
    %c0_176 = arith.constant 0 : index
    %409 = vector.load %arg13[%c0_174, %c5, %c0_175, %c0_176] : memref<1x8x16x4xf32, #tpu.memory_space<vmem>>, vector<1x1x16x4xf32>
    %410 = vector.shape_cast %409 : vector<1x1x16x4xf32> to vector<16x4xf32>
    %411 = arith.addf %408, %410 : vector<16x4xf32>
    %c0_177 = arith.constant 0 : index
    %c5_178 = arith.constant 5 : index
    %c0_179 = arith.constant 0 : index
    %c0_180 = arith.constant 0 : index
    %412 = vector.load %arg14[%c0_177, %c5_178, %c0_179, %c0_180] : memref<1x8x16x4xf32, #tpu.memory_space<vmem>>, vector<1x1x16x4xf32>
    %413 = vector.shape_cast %412 : vector<1x1x16x4xf32> to vector<16x4xf32>
    %414 = vector.shape_cast %411 : vector<16x4xf32> to vector<1x1x16x4xf32>
    tpu.vector_store %arg14[%c0_177, %c5_178, %c0_179, %c0_180], %414 {strides = array<i32>} : memref<1x8x16x4xf32, #tpu.memory_space<vmem>>, vector<1x1x16x4xf32>,
    %cst_181 = arith.constant 0.000000e+00 : f32
    %415 = vector.broadcast %cst_181 : f32 to vector<16x24xf32>
    %c108_182 = arith.constant 108 : index
    %c0_183 = arith.constant 0 : index
    %416 = vector.load %arg15[%c108_182, %c0_183] : memref<180x24xf32, #tpu.memory_space<vmem>>, vector<16x24xf32>
    %417 = vector.extract_strided_slice %19 {offsets = [0, 0], sizes = [1, 24], strides = [1, 1]} : vector<9x24xf32> to vector<1x24xf32>
    %418 = vector.broadcast %417 : vector<1x24xf32> to vector<16x24xf32>
    %419 = arith.mulf %416, %418 : vector<16x24xf32>
    %420 = arith.addf %415, %419 : vector<16x24xf32>
    %c109_184 = arith.constant 109 : index
    %c0_185 = arith.constant 0 : index
    %421 = vector.load %arg15[%c109_184, %c0_185] : memref<180x24xf32, #tpu.memory_space<vmem>>, vector<16x24xf32>
    %422 = vector.extract_strided_slice %19 {offsets = [1, 0], sizes = [1, 24], strides = [1, 1]} : vector<9x24xf32> to vector<1x24xf32>
    %423 = vector.broadcast %422 : vector<1x24xf32> to vector<16x24xf32>
    %424 = arith.mulf %421, %423 : vector<16x24xf32>
    %425 = arith.addf %420, %424 : vector<16x24xf32>
    %c110_186 = arith.constant 110 : index
    %c0_187 = arith.constant 0 : index
    %426 = vector.load %arg15[%c110_186, %c0_187] : memref<180x24xf32, #tpu.memory_space<vmem>>, vector<16x24xf32>
    %427 = vector.extract_strided_slice %19 {offsets = [2, 0], sizes = [1, 24], strides = [1, 1]} : vector<9x24xf32> to vector<1x24xf32>
    %428 = vector.broadcast %427 : vector<1x24xf32> to vector<16x24xf32>
    %429 = arith.mulf %426, %428 : vector<16x24xf32>
    %430 = arith.addf %425, %429 : vector<16x24xf32>
    %c126_188 = arith.constant 126 : index
    %c0_189 = arith.constant 0 : index
    %431 = vector.load %arg15[%c126_188, %c0_189] : memref<180x24xf32, #tpu.memory_space<vmem>>, vector<16x24xf32>
    %432 = vector.extract_strided_slice %19 {offsets = [3, 0], sizes = [1, 24], strides = [1, 1]} : vector<9x24xf32> to vector<1x24xf32>
    %433 = vector.broadcast %432 : vector<1x24xf32> to vector<16x24xf32>
    %434 = arith.mulf %431, %433 : vector<16x24xf32>
    %435 = arith.addf %430, %434 : vector<16x24xf32>
    %c127_190 = arith.constant 127 : index
    %c0_191 = arith.constant 0 : index
    %436 = vector.load %arg15[%c127_190, %c0_191] : memref<180x24xf32, #tpu.memory_space<vmem>>, vector<16x24xf32>
    %437 = vector.extract_strided_slice %19 {offsets = [4, 0], sizes = [1, 24], strides = [1, 1]} : vector<9x24xf32> to vector<1x24xf32>
    %438 = vector.broadcast %437 : vector<1x24xf32> to vector<16x24xf32>
    %439 = arith.mulf %436, %438 : vector<16x24xf32>
    %440 = arith.addf %435, %439 : vector<16x24xf32>
    %c128_192 = arith.constant 128 : index
    %c0_193 = arith.constant 0 : index
    %441 = vector.load %arg15[%c128_192, %c0_193] : memref<180x24xf32, #tpu.memory_space<vmem>>, vector<16x24xf32>
    %442 = vector.extract_strided_slice %19 {offsets = [5, 0], sizes = [1, 24], strides = [1, 1]} : vector<9x24xf32> to vector<1x24xf32>
    %443 = vector.broadcast %442 : vector<1x24xf32> to vector<16x24xf32>
    %444 = arith.mulf %441, %443 : vector<16x24xf32>
    %445 = arith.addf %440, %444 : vector<16x24xf32>
    %c144 = arith.constant 144 : index
    %c0_194 = arith.constant 0 : index
    %446 = vector.load %arg15[%c144, %c0_194] : memref<180x24xf32, #tpu.memory_space<vmem>>, vector<16x24xf32>
    %447 = vector.extract_strided_slice %19 {offsets = [6, 0], sizes = [1, 24], strides = [1, 1]} : vector<9x24xf32> to vector<1x24xf32>
    %448 = vector.broadcast %447 : vector<1x24xf32> to vector<16x24xf32>
    %449 = arith.mulf %446, %448 : vector<16x24xf32>
    %450 = arith.addf %445, %449 : vector<16x24xf32>
    %c145 = arith.constant 145 : index
    %c0_195 = arith.constant 0 : index
    %451 = vector.load %arg15[%c145, %c0_195] : memref<180x24xf32, #tpu.memory_space<vmem>>, vector<16x24xf32>
    %452 = vector.extract_strided_slice %19 {offsets = [7, 0], sizes = [1, 24], strides = [1, 1]} : vector<9x24xf32> to vector<1x24xf32>
    %453 = vector.broadcast %452 : vector<1x24xf32> to vector<16x24xf32>
    %454 = arith.mulf %451, %453 : vector<16x24xf32>
    %455 = arith.addf %450, %454 : vector<16x24xf32>
    %c146 = arith.constant 146 : index
    %c0_196 = arith.constant 0 : index
    %456 = vector.load %arg15[%c146, %c0_196] : memref<180x24xf32, #tpu.memory_space<vmem>>, vector<16x24xf32>
    %457 = vector.extract_strided_slice %19 {offsets = [8, 0], sizes = [1, 24], strides = [1, 1]} : vector<9x24xf32> to vector<1x24xf32>
    %458 = vector.broadcast %457 : vector<1x24xf32> to vector<16x24xf32>
    %459 = arith.mulf %456, %458 : vector<16x24xf32>
    %460 = arith.addf %455, %459 : vector<16x24xf32>
    %461 = vector.broadcast %20 : vector<1x24xf32> to vector<16x24xf32>
    %462 = arith.mulf %460, %461 : vector<16x24xf32>
    %463 = vector.broadcast %21 : vector<1x24xf32> to vector<16x24xf32>
    %464 = arith.addf %462, %463 : vector<16x24xf32>
    %cst_197 = arith.constant 0.000000e+00 : f32
    %cst_198 = arith.constant 6.000000e+00 : f32
    %465 = vector.broadcast %cst_197 : f32 to vector<16x24xf32>
    %466 = arith.maximumf %465, %464 : vector<16x24xf32>
    %467 = vector.broadcast %cst_198 : f32 to vector<16x24xf32>
    %468 = arith.minimumf %467, %466 : vector<16x24xf32>
    %cst_199 = arith.constant dense<0.000000e+00> : vector<16x4xf32>
    %469 = tpu.matmul %468, %22, %cst_199 {dimension_numbers = #tpu.dot_dimension_numbers<[1], [0], [0], [1], [0, 0, 1, 1], [], []>} : vector<16x24xf32>, vector<24x4xf32>, vector<16x4xf32> -> vector<16x4xf32>
    %470 = vector.broadcast %23 : vector<1x4xf32> to vector<16x4xf32>
    %471 = arith.mulf %469, %470 : vector<16x4xf32>
    %472 = vector.broadcast %24 : vector<1x4xf32> to vector<16x4xf32>
    %473 = arith.addf %471, %472 : vector<16x4xf32>
    %c0_200 = arith.constant 0 : index
    %c6 = arith.constant 6 : index
    %c0_201 = arith.constant 0 : index
    %c0_202 = arith.constant 0 : index
    %474 = vector.load %arg13[%c0_200, %c6, %c0_201, %c0_202] : memref<1x8x16x4xf32, #tpu.memory_space<vmem>>, vector<1x1x16x4xf32>
    %475 = vector.shape_cast %474 : vector<1x1x16x4xf32> to vector<16x4xf32>
    %476 = arith.addf %473, %475 : vector<16x4xf32>
    %c0_203 = arith.constant 0 : index
    %c6_204 = arith.constant 6 : index
    %c0_205 = arith.constant 0 : index
    %c0_206 = arith.constant 0 : index
    %477 = vector.load %arg14[%c0_203, %c6_204, %c0_205, %c0_206] : memref<1x8x16x4xf32, #tpu.memory_space<vmem>>, vector<1x1x16x4xf32>
    %478 = vector.shape_cast %477 : vector<1x1x16x4xf32> to vector<16x4xf32>
    %479 = vector.shape_cast %476 : vector<16x4xf32> to vector<1x1x16x4xf32>
    tpu.vector_store %arg14[%c0_203, %c6_204, %c0_205, %c0_206], %479 {strides = array<i32>} : memref<1x8x16x4xf32, #tpu.memory_space<vmem>>, vector<1x1x16x4xf32>,
    %cst_207 = arith.constant 0.000000e+00 : f32
    %480 = vector.broadcast %cst_207 : f32 to vector<16x24xf32>
    %c126_208 = arith.constant 126 : index
    %c0_209 = arith.constant 0 : index
    %481 = vector.load %arg15[%c126_208, %c0_209] : memref<180x24xf32, #tpu.memory_space<vmem>>, vector<16x24xf32>
    %482 = vector.extract_strided_slice %19 {offsets = [0, 0], sizes = [1, 24], strides = [1, 1]} : vector<9x24xf32> to vector<1x24xf32>
    %483 = vector.broadcast %482 : vector<1x24xf32> to vector<16x24xf32>
    %484 = arith.mulf %481, %483 : vector<16x24xf32>
    %485 = arith.addf %480, %484 : vector<16x24xf32>
    %c127_210 = arith.constant 127 : index
    %c0_211 = arith.constant 0 : index
    %486 = vector.load %arg15[%c127_210, %c0_211] : memref<180x24xf32, #tpu.memory_space<vmem>>, vector<16x24xf32>
    %487 = vector.extract_strided_slice %19 {offsets = [1, 0], sizes = [1, 24], strides = [1, 1]} : vector<9x24xf32> to vector<1x24xf32>
    %488 = vector.broadcast %487 : vector<1x24xf32> to vector<16x24xf32>
    %489 = arith.mulf %486, %488 : vector<16x24xf32>
    %490 = arith.addf %485, %489 : vector<16x24xf32>
    %c128_212 = arith.constant 128 : index
    %c0_213 = arith.constant 0 : index
    %491 = vector.load %arg15[%c128_212, %c0_213] : memref<180x24xf32, #tpu.memory_space<vmem>>, vector<16x24xf32>
    %492 = vector.extract_strided_slice %19 {offsets = [2, 0], sizes = [1, 24], strides = [1, 1]} : vector<9x24xf32> to vector<1x24xf32>
    %493 = vector.broadcast %492 : vector<1x24xf32> to vector<16x24xf32>
    %494 = arith.mulf %491, %493 : vector<16x24xf32>
    %495 = arith.addf %490, %494 : vector<16x24xf32>
    %c144_214 = arith.constant 144 : index
    %c0_215 = arith.constant 0 : index
    %496 = vector.load %arg15[%c144_214, %c0_215] : memref<180x24xf32, #tpu.memory_space<vmem>>, vector<16x24xf32>
    %497 = vector.extract_strided_slice %19 {offsets = [3, 0], sizes = [1, 24], strides = [1, 1]} : vector<9x24xf32> to vector<1x24xf32>
    %498 = vector.broadcast %497 : vector<1x24xf32> to vector<16x24xf32>
    %499 = arith.mulf %496, %498 : vector<16x24xf32>
    %500 = arith.addf %495, %499 : vector<16x24xf32>
    %c145_216 = arith.constant 145 : index
    %c0_217 = arith.constant 0 : index
    %501 = vector.load %arg15[%c145_216, %c0_217] : memref<180x24xf32, #tpu.memory_space<vmem>>, vector<16x24xf32>
    %502 = vector.extract_strided_slice %19 {offsets = [4, 0], sizes = [1, 24], strides = [1, 1]} : vector<9x24xf32> to vector<1x24xf32>
    %503 = vector.broadcast %502 : vector<1x24xf32> to vector<16x24xf32>
    %504 = arith.mulf %501, %503 : vector<16x24xf32>
    %505 = arith.addf %500, %504 : vector<16x24xf32>
    %c146_218 = arith.constant 146 : index
    %c0_219 = arith.constant 0 : index
    %506 = vector.load %arg15[%c146_218, %c0_219] : memref<180x24xf32, #tpu.memory_space<vmem>>, vector<16x24xf32>
    %507 = vector.extract_strided_slice %19 {offsets = [5, 0], sizes = [1, 24], strides = [1, 1]} : vector<9x24xf32> to vector<1x24xf32>
    %508 = vector.broadcast %507 : vector<1x24xf32> to vector<16x24xf32>
    %509 = arith.mulf %506, %508 : vector<16x24xf32>
    %510 = arith.addf %505, %509 : vector<16x24xf32>
    %c162 = arith.constant 162 : index
    %c0_220 = arith.constant 0 : index
    %511 = vector.load %arg15[%c162, %c0_220] : memref<180x24xf32, #tpu.memory_space<vmem>>, vector<16x24xf32>
    %512 = vector.extract_strided_slice %19 {offsets = [6, 0], sizes = [1, 24], strides = [1, 1]} : vector<9x24xf32> to vector<1x24xf32>
    %513 = vector.broadcast %512 : vector<1x24xf32> to vector<16x24xf32>
    %514 = arith.mulf %511, %513 : vector<16x24xf32>
    %515 = arith.addf %510, %514 : vector<16x24xf32>
    %c163 = arith.constant 163 : index
    %c0_221 = arith.constant 0 : index
    %516 = vector.load %arg15[%c163, %c0_221] : memref<180x24xf32, #tpu.memory_space<vmem>>, vector<16x24xf32>
    %517 = vector.extract_strided_slice %19 {offsets = [7, 0], sizes = [1, 24], strides = [1, 1]} : vector<9x24xf32> to vector<1x24xf32>
    %518 = vector.broadcast %517 : vector<1x24xf32> to vector<16x24xf32>
    %519 = arith.mulf %516, %518 : vector<16x24xf32>
    %520 = arith.addf %515, %519 : vector<16x24xf32>
    %c164 = arith.constant 164 : index
    %c0_222 = arith.constant 0 : index
    %521 = vector.load %arg15[%c164, %c0_222] : memref<180x24xf32, #tpu.memory_space<vmem>>, vector<16x24xf32>
    %522 = vector.extract_strided_slice %19 {offsets = [8, 0], sizes = [1, 24], strides = [1, 1]} : vector<9x24xf32> to vector<1x24xf32>
    %523 = vector.broadcast %522 : vector<1x24xf32> to vector<16x24xf32>
    %524 = arith.mulf %521, %523 : vector<16x24xf32>
    %525 = arith.addf %520, %524 : vector<16x24xf32>
    %526 = vector.broadcast %20 : vector<1x24xf32> to vector<16x24xf32>
    %527 = arith.mulf %525, %526 : vector<16x24xf32>
    %528 = vector.broadcast %21 : vector<1x24xf32> to vector<16x24xf32>
    %529 = arith.addf %527, %528 : vector<16x24xf32>
    %cst_223 = arith.constant 0.000000e+00 : f32
    %cst_224 = arith.constant 6.000000e+00 : f32
    %530 = vector.broadcast %cst_223 : f32 to vector<16x24xf32>
    %531 = arith.maximumf %530, %529 : vector<16x24xf32>
    %532 = vector.broadcast %cst_224 : f32 to vector<16x24xf32>
    %533 = arith.minimumf %532, %531 : vector<16x24xf32>
    %cst_225 = arith.constant dense<0.000000e+00> : vector<16x4xf32>
    %534 = tpu.matmul %533, %22, %cst_225 {dimension_numbers = #tpu.dot_dimension_numbers<[1], [0], [0], [1], [0, 0, 1, 1], [], []>} : vector<16x24xf32>, vector<24x4xf32>, vector<16x4xf32> -> vector<16x4xf32>
    %535 = vector.broadcast %23 : vector<1x4xf32> to vector<16x4xf32>
    %536 = arith.mulf %534, %535 : vector<16x4xf32>
    %537 = vector.broadcast %24 : vector<1x4xf32> to vector<16x4xf32>
    %538 = arith.addf %536, %537 : vector<16x4xf32>
    %c0_226 = arith.constant 0 : index
    %c7 = arith.constant 7 : index
    %c0_227 = arith.constant 0 : index
    %c0_228 = arith.constant 0 : index
    %539 = vector.load %arg13[%c0_226, %c7, %c0_227, %c0_228] : memref<1x8x16x4xf32, #tpu.memory_space<vmem>>, vector<1x1x16x4xf32>
    %540 = vector.shape_cast %539 : vector<1x1x16x4xf32> to vector<16x4xf32>
    %541 = arith.addf %538, %540 : vector<16x4xf32>
    %c0_229 = arith.constant 0 : index
    %c7_230 = arith.constant 7 : index
    %c0_231 = arith.constant 0 : index
    %c0_232 = arith.constant 0 : index
    %542 = vector.load %arg14[%c0_229, %c7_230, %c0_231, %c0_232] : memref<1x8x16x4xf32, #tpu.memory_space<vmem>>, vector<1x1x16x4xf32>
    %543 = vector.shape_cast %542 : vector<1x1x16x4xf32> to vector<16x4xf32>
    %544 = vector.shape_cast %541 : vector<16x4xf32> to vector<1x1x16x4xf32>
    tpu.vector_store %arg14[%c0_229, %c7_230, %c0_231, %c0_232], %544 {strides = array<i32>} : memref<1x8x16x4xf32, #tpu.memory_space<vmem>>, vector<1x1x16x4xf32>,
    return
  }
  func.func @transform_0(%arg0: i32, %arg1: i32) -> (i32, i32, i32) {
    %c2_i32 = arith.constant 2 : i32
    %0 = arith.muli %arg0, %c2_i32 : i32
    %1 = arith.addi %0, %arg1 : i32
    %c0_i32 = arith.constant 0 : i32
    %c0_i32_0 = arith.constant 0 : i32
    %c0_i32_1 = arith.constant 0 : i32
    return %1, %c0_i32, %c0_i32_0 : i32, i32, i32
  }
  func.func @transform_1(%arg0: i32, %arg1: i32) -> (i32, i32, i32) {
    %c0_i32 = arith.constant 0 : i32
    %c0_i32_0 = arith.constant 0 : i32
    %c0_i32_1 = arith.constant 0 : i32
    return %arg1, %c0_i32, %c0_i32_0 : i32, i32, i32
  }
  func.func @transform_2(%arg0: i32, %arg1: i32) -> (i32, i32) {
    %c0_i32 = arith.constant 0 : i32
    %c0_i32_0 = arith.constant 0 : i32
    %c0_i32_1 = arith.constant 0 : i32
    return %c0_i32, %c0_i32_0 : i32, i32
  }
  func.func @transform_3(%arg0: i32, %arg1: i32) -> (i32, i32) {
    %c0_i32 = arith.constant 0 : i32
    %c0_i32_0 = arith.constant 0 : i32
    %c0_i32_1 = arith.constant 0 : i32
    return %c0_i32, %c0_i32_0 : i32, i32
  }
  func.func @transform_4(%arg0: i32, %arg1: i32) -> (i32, i32) {
    %c0_i32 = arith.constant 0 : i32
    %c0_i32_0 = arith.constant 0 : i32
    %c0_i32_1 = arith.constant 0 : i32
    return %c0_i32, %c0_i32_0 : i32, i32
  }
  func.func @transform_5(%arg0: i32, %arg1: i32) -> (i32, i32) {
    %c0_i32 = arith.constant 0 : i32
    %c0_i32_0 = arith.constant 0 : i32
    %c0_i32_1 = arith.constant 0 : i32
    return %c0_i32, %c0_i32_0 : i32, i32
  }
  func.func @transform_6(%arg0: i32, %arg1: i32) -> (i32, i32) {
    %c0_i32 = arith.constant 0 : i32
    %c0_i32_0 = arith.constant 0 : i32
    %c0_i32_1 = arith.constant 0 : i32
    return %c0_i32, %c0_i32_0 : i32, i32
  }
  func.func @transform_7(%arg0: i32, %arg1: i32) -> (i32, i32) {
    %c0_i32 = arith.constant 0 : i32
    %c0_i32_0 = arith.constant 0 : i32
    %c0_i32_1 = arith.constant 0 : i32
    return %c0_i32, %c0_i32_0 : i32, i32
  }
  func.func @transform_8(%arg0: i32, %arg1: i32) -> (i32, i32) {
    %c0_i32 = arith.constant 0 : i32
    %c0_i32_0 = arith.constant 0 : i32
    %c0_i32_1 = arith.constant 0 : i32
    return %c0_i32, %c0_i32_0 : i32, i32
  }
  func.func @transform_9(%arg0: i32, %arg1: i32) -> (i32, i32) {
    %c0_i32 = arith.constant 0 : i32
    %c0_i32_0 = arith.constant 0 : i32
    %c0_i32_1 = arith.constant 0 : i32
    return %c0_i32, %c0_i32_0 : i32, i32
  }
  func.func @transform_10(%arg0: i32, %arg1: i32) -> (i32, i32) {
    %c0_i32 = arith.constant 0 : i32
    %c0_i32_0 = arith.constant 0 : i32
    %c0_i32_1 = arith.constant 0 : i32
    return %c0_i32, %c0_i32_0 : i32, i32
  }
  func.func @transform_11(%arg0: i32, %arg1: i32) -> (i32, i32, i32, i32) {
    %c2_i32 = arith.constant 2 : i32
    %0 = arith.muli %arg0, %c2_i32 : i32
    %1 = arith.addi %0, %arg1 : i32
    %c0_i32 = arith.constant 0 : i32
    %c0_i32_0 = arith.constant 0 : i32
    %c0_i32_1 = arith.constant 0 : i32
    %c0_i32_2 = arith.constant 0 : i32
    return %1, %c0_i32, %c0_i32_0, %c0_i32_1 : i32, i32, i32, i32
  }
  func.func @transform_12(%arg0: i32, %arg1: i32) -> (i32, i32, i32, i32) {
    %c2_i32 = arith.constant 2 : i32
    %0 = arith.muli %arg0, %c2_i32 : i32
    %1 = arith.addi %0, %arg1 : i32
    %c0_i32 = arith.constant 0 : i32
    %c0_i32_0 = arith.constant 0 : i32
    %c0_i32_1 = arith.constant 0 : i32
    %c0_i32_2 = arith.constant 0 : i32
    return %1, %c0_i32, %c0_i32_0, %c0_i32_1 : i32, i32, i32, i32
  }
}

</mosaic_0001>

<bundles_post_ra>
// kernel: tpu_custom_call.1
= control target key start
LH: loop header
LB: loop body
LE: loop exit
PB: predicated region body
PF: predicated region fallthrough
CT: control target
= control target key end

     0   :  { %s2177_s21 = smov 0   ;;  %s2179_s22 = smov 0   ;;  %s2951_s0 = inlined_call_operand.vmem [shape: f32[4,180,4], index: 0, kind: input, shape index: {}]   ;;  %s2952_s1 = inlined_call_operand.vmem [shape: f32[2,180,1], index: 1, kind: input, shape index: {}]   ;;  %s2953_s2 = inlined_call_operand.vmem [shape: f32[4,24], index: 2, kind: input, shape index: {}]   ;;  %s2954_s3 = inlined_call_operand.vmem [shape: f32[1,24], index: 3, kind: input, shape index: {}]   ;;  %s2955_s4 = inlined_call_operand.vmem [shape: f32[1,24], index: 4, kind: input, shape index: {}]   ;;  %s2956_s5 = inlined_call_operand.vmem [shape: f32[9,24], index: 5, kind: input, shape index: {}]   ;;  %s2957_s6 = inlined_call_operand.vmem [shape: f32[1,24], index: 6, kind: input, shape index: {}]   ;;  %s2958_s7 = inlined_call_operand.vmem [shape: f32[1,24], index: 7, kind: input, shape index: {}]   ;;  %s2959_s8 = inlined_call_operand.vmem [shape: f32[24,4], index: 8, kind: input, shape index: {}]   ;;  %s2960_s9 = inlined_call_operand.vmem [shape: f32[1,4], index: 9, kind: input, shape index: {}]   ;;  %s2961_s10 = inlined_call_operand.vmem [shape: f32[1,4], index: 10, kind: input, shape index: {}]   ;;  %s2962_s11 = inlined_call_operand.vmem [shape: f32[4,8,16,4], index: 11, kind: input, shape index: {}]   ;;  %s2963_s12 = inlined_call_operand.vmem [shape: f32[4,8,16,4], index: 12, kind: output, shape index: {}]  }
   0x1   :  { %s2181_s23 = smov 0   ;;  %s2183_s24 = smov 0  }
   0x2   :  { %s2185_s25 = smov 0  }
   0x3 LB: > { %s31_s26 = sadd.s32 1, %s2101_s23  ;;  %s34_s27 = sadd.s32 1, %s2105_s24  ;;  %s2109_s25 = sphi %s2185_s25, %s22_s25   ;;  %s2105_s24 = sphi %s2183_s24, %s3009_s24   ;;  %s2101_s23 = sphi %s2181_s23, %s3008_s23   ;;  %s2097_s22 = sphi %s2179_s22, %s3007_s22   ;;  %s2093_s21 = sphi %s2177_s21, %s3006_s21  }
   0x4   : > { %p32_p0 = scmp.ge.s32.totalorder %s31_s26, 2  ;;  %p1933_p1 = scmp.ge.s32.totalorder %s2109_s25, 1 }
   0x5   : > { %p414_p2 = scmp.lt.s32.totalorder %s2109_s25, 5 }
   0x6   : > { %s3011_s26 = smov (%p32_p0, %s31_s26), 0  ;;  %s3013_s27 = smov (!%p32_p0, %s34_s27), %s2105_s24 }
   0x7   : > { %p415_p3 = pnand %p1933_p1, %p414_p2  ;;  %p36_p4 = scmp.ge.s32.totalorder %s3013_s27, 2 }
   0x9   : > { %s3015_s27 = smov (%p36_p4, %s3013_s27), 0  ;;  %418 = sbr.rel (%p415_p3) target bundleno = 430 (0x1ae), region = 68 }
   0xe   : > { %v527_v0 = vld [vmem:[%s2953_s2] sm:$0xf]  ;;  %vm598_vm0 = vcmask 1043456   ;;  %s1934_s30 = sshll.u32 %s2097_s22, 1  ;;  %p481_p5 = scmp.lt.s32.totalorder %s2093_s21, 1  ;;  %v2111_v1 = vmov 0  }
   0xf   : > { %1943 = vmatpush.msk.msra.mxu0 %vm598_vm0, %v527_v0  ;;  %2017 = vmatpush.msk.msra.mxu3 %vm598_vm0, %v527_v0  ;;  %s473_s13 = sadd.s32 %s2093_s21, %s1934_s30  ;;  %vm528_vm1 = vcmask 31744   ;;  %v2305_v55 = vld [vmem:[%s2954_s3] ss:$0 sm:$0xff]  ;;  %vm949_vm2 = vcmask 195584   ;;  %vm972_vm3 = vcmask 191488  }
  0x10   : > { %2061 = vset.pattern.permute.xlu0 %v2111_v1  ;;  %p474_p6 = scmp.lt.s32.totalorder %s473_s13, 3  ;;  %2062 = vset.pattern.permute.xlu1 %v2111_v1  ;;  %s3017_s21 = smov (!%p481_p5, %s2093_s21), 1  ;;  %v2310_v56 = vld [vmem:[%s2955_s4] ss:$0 sm:$0xff] }
  0x11   : > { %2015 = vmatpush.msk.msra.mxu1 %vm598_vm0, %v527_v0  ;;  %2016 = vmatpush.msk.msra.mxu2 %vm598_vm0, %v527_v0  ;;  %s2019_s14 = smul.u32 184, %s3017_s21 }
  0x12   : > { %s3019_s13 = smov (!%p474_p6, %s473_s13), 3  ;;  %2063 = vset.pattern.permute.xlu2 %v2111_v1 }
  0x13   : > { %s2018_s15 = smul.u32 184, %s3019_s13  ;;  %s2216_s18 = scalar_lea.vmem %s2952_s1, %s2019_s14 }
  0x14   : > { %v790_v2 = vld [vmem:[%s2216_s18 + $0x10] sm:$0xff]  ;;  %v792_v3 = vld [vmem:[%s2216_s18 + $0x20] sm:$0xff]  ;;  %v791_v8 = vld [vmem:[%s2216_s18 + $0x18] sm:$0xff]  ;;  %s2013_s16 = sshll.u32 %s3019_s13, 7 }
  0x15   : > { %s2221_s22 = scalar_lea.vmem %s2951_s0, %s2018_s15  ;;  %823 = vperm.xlu0 %2061, %v790_v2   ;;  %833 = vperm.xlu1 %2062, %v792_v3   ;;  %v793_v9 = vld [vmem:[%s2216_s18 + $0x28] sm:$0xff]  ;;  %v788_v14 = vld [vmem:[%s2216_s18] sm:$0xff]  ;;  %v794_v15 = vld [vmem:[%s2216_s18 + $0x30] sm:$0xff]  ;;  %s2857_s30 = scalar_lea.vmem %s2963_s12, %s2013_s16 }
  0x16   : > { %v504_v4 = vld [vmem:[%s2221_s22] sm:$0xff]  ;;  %v521_v5 = vld [vmem:[%s2221_s22 + $0x88] sm:$0xff]  ;;  %v514_v6 = vld [vmem:[%s2221_s22 + $0x50] sm:$0xff]  ;;  %813 = vperm.xlu2 %2063, %v788_v14  }
  0x17   : > { %1944 = vmatmul.msk.f32.vlgmr.msra.gmra.mxu0 %vm528_vm1, %v504_v4  ;;  %1961 = vmatmul.msk.f32.vlgmr.msra.gmra.mxu3 %vm528_vm1, %v521_v5  ;;  %v518_v7 = vld [vmem:[%s2221_s22 + $0x70] sm:$0xff]  ;;  %v505_v10 = vld [vmem:[%s2221_s22 + $0x8] sm:$0xff]  ;;  %v515_v12 = vld [vmem:[%s2221_s22 + $0x58] sm:$0xff] }
  0x18   : > { %1954 = vmatmul.msk.f32.vlgmr.msra.gmra.mxu1 %vm528_vm1, %v514_v6  ;;  %1958 = vmatmul.msk.f32.vlgmr.msra.gmra.mxu2 %vm528_vm1, %v518_v7  ;;  %v522_v11 = vld [vmem:[%s2221_s22 + $0x90] sm:$0xff]  ;;  %v519_v13 = vld [vmem:[%s2221_s22 + $0x78] sm:$0xff]  ;;  %v516_v19 = vld [vmem:[%s2221_s22 + $0x60] sm:$0xff] }
  0x19   : > { %v795_v16 = vld [vmem:[%s2216_s18 + $0x38] sm:$0xff]  ;;  %v506_v17 = vld [vmem:[%s2221_s22 + $0x10] sm:$0xff]  ;;  %v520_v20 = vld [vmem:[%s2221_s22 + $0x80] sm:$0xff] }
  0x1a   : > { %v523_v18 = vld [vmem:[%s2221_s22 + $0x98] sm:$0xff]  ;;  %v789_v21 = vld [vmem:[%s2216_s18 + $0x8] sm:$0xff]  ;;  %v798_v22 = vld [vmem:[%s2216_s18 + $0x50] sm:$0xff] }
  0x1b   : > { %v796_v23 = vld [vmem:[%s2216_s18 + $0x40] sm:$0xff]  ;;  %v507_v24 = vld [vmem:[%s2221_s22 + $0x18] sm:$0xff]  ;;  %v517_v26 = vld [vmem:[%s2221_s22 + $0x68] sm:$0xff] }
  0x1c   : > { %v524_v25 = vld [vmem:[%s2221_s22 + $0xa0] sm:$0xff]  ;;  %v797_v27 = vld [vmem:[%s2216_s18 + $0x48] sm:$0xff]  ;;  %v799_v32 = vld [vmem:[%s2216_s18 + $0x58] sm:$0xff] }
  0x1d   : > { %828 = vperm.xlu0 %2061, %v791_v8   ;;  %838 = vperm.xlu1 %2062, %v793_v9   ;;  %v800_v28 = vld [vmem:[%s2216_s18 + $0x60] sm:$0xff]  ;;  %v801_v29 = vld [vmem:[%s2216_s18 + $0x68] sm:$0xff]  ;;  %v803_v33 = vld [vmem:[%s2216_s18 + $0x78] sm:$0xff] }
  0x1e   : > { %818 = vperm.xlu2 %2063, %v789_v21   ;;  %v508_v30 = vld [vmem:[%s2221_s22 + $0x20] sm:$0xff]  ;;  %v525_v31 = vld [vmem:[%s2221_s22 + $0xa8] sm:$0xff]  ;;  %v526_v36 = vld [vmem:[%s2221_s22 + $0xb0] sm:$0xf] }
  0x1f   : > { %1945 = vmatmul.msk.f32.gmra.mxu0 %vm528_vm1, %v505_v10  ;;  %1962 = vmatmul.msk.f32.gmra.mxu3 %vm528_vm1, %v522_v11  ;;  %v804_v34 = vld [vmem:[%s2216_s18 + $0x80] sm:$0xff]  ;;  %v509_v35 = vld [vmem:[%s2221_s22 + $0x28] sm:$0xff]  ;;  %v802_v37 = vld [vmem:[%s2216_s18 + $0x70] sm:$0xff] }
  0x20   : > { %1955 = vmatmul.msk.f32.gmra.mxu1 %vm528_vm1, %v515_v12  ;;  %1959 = vmatmul.msk.f32.gmra.mxu2 %vm528_vm1, %v519_v13  ;;  %v807_v38 = vld [vmem:[%s2216_s18 + $0x98] sm:$0xff]  ;;  %v805_v39 = vld [vmem:[%s2216_s18 + $0x88] sm:$0xff]  ;;  %v510_v40 = vld [vmem:[%s2221_s22 + $0x30] sm:$0xff] }
  0x21   : > { %v806_v41 = vld [vmem:[%s2216_s18 + $0x90] sm:$0xff]  ;;  %v809_v42 = vld [vmem:[%s2216_s18 + $0xa8] sm:$0xff]  ;;  %v511_v44 = vld [vmem:[%s2221_s22 + $0x38] sm:$0xff] }
  0x22   : > { %v810_v43 = vld [vmem:[%s2216_s18 + $0xb0] sm:$0xf]  ;;  %v808_v45 = vld [vmem:[%s2216_s18 + $0xa0] sm:$0xff]  ;;  %v513_v47 = vld [vmem:[%s2221_s22 + $0x48] sm:$0xff] }
  0x23   : > { %v512_v46 = vld [vmem:[%s2221_s22 + $0x40] sm:$0xff]  ;;  %s2844_s22 = scalar_lea.vmem %s2962_s11, %s2013_s16 }
  0x25   : > { %843 = vperm.xlu0 %2061, %v794_v15   ;;  %848 = vperm.xlu1 %2062, %v795_v16  }
  0x26   : > { %858 = vperm.xlu2 %2063, %v797_v27  }
  0x27   : > { %1946 = vmatmul.msk.f32.gmra.mxu0 %vm528_vm1, %v506_v17  ;;  %1963 = vmatmul.msk.f32.gmra.mxu3 %vm528_vm1, %v523_v18 }
  0x28   : > { %1956 = vmatmul.msk.f32.gmra.mxu1 %vm528_vm1, %v516_v19  ;;  %1960 = vmatmul.msk.f32.gmra.mxu2 %vm528_vm1, %v520_v20 }
  0x2d   : > { %863 = vperm.xlu0 %2061, %v798_v22   ;;  %853 = vperm.xlu1 %2062, %v796_v23  }
  0x2e   : > { %868 = vperm.xlu2 %2063, %v799_v32  }
  0x2f   : > { %1947 = vmatmul.msk.f32.gmra.mxu0 %vm528_vm1, %v507_v24  ;;  %1964 = vmatmul.msk.f32.gmra.mxu3 %vm528_vm1, %v524_v25 }
  0x30   : > { %1957 = vmatmul.msk.f32.gmra.mxu1 %vm528_vm1, %v517_v26 }
  0x35   : > { %873 = vperm.xlu0 %2061, %v800_v28   ;;  %878 = vperm.xlu1 %2062, %v801_v29  }
  0x36   : > { %883 = vperm.xlu2 %2063, %v802_v37  }
  0x37   : > { %1948 = vmatmul.msk.f32.gmra.mxu0 %vm528_vm1, %v508_v30  ;;  %1965 = vmatmul.msk.f32.gmra.mxu3 %vm528_vm1, %v525_v31 }
  0x3d   : > { %888 = vperm.xlu0 %2061, %v803_v33   ;;  %893 = vperm.xlu1 %2062, %v804_v34  }
  0x3e   : > { %903 = vperm.xlu2 %2063, %v806_v41  }
  0x3f   : > { %1949 = vmatmul.msk.f32.gmra.mxu0 %vm528_vm1, %v509_v35  ;;  %1966 = vmatmul.msk.f32.gmra.mxu3 %vm528_vm1, %v526_v36 }
  0x45   : > { %908 = vperm.xlu0 %2061, %v807_v38   ;;  %898 = vperm.xlu1 %2062, %v805_v39  }
  0x46   : > { %913 = vperm.xlu2 %2063, %v808_v45  }
  0x47   : > { %1950 = vmatmul.msk.f32.gmra.mxu0 %vm528_vm1, %v510_v40 }
  0x4d   : > { %918 = vperm.xlu0 %2061, %v809_v42   ;;  %923 = vperm.xlu1 %2062, %v810_v43  }
  0x4f   : > { %1951 = vmatmul.msk.f32.gmra.mxu0 %vm528_vm1, %v511_v44 }
  0x57   : > { %1952 = vmatmul.msk.f32.gmra.mxu0 %vm528_vm1, %v512_v46 }
  0x5f   : > { %1953 = vmatmul.msk.f32.gmra.mxu0 %vm528_vm1, %v513_v47 }
  0x70   : > { %v814_v48 = vpop.permute.xlu2 %813 }
  0x78   : > { %v819_v49 = vpop.permute.xlu2 %818 }
  0x80   : > { %v2296_v52 = vpop.permute.xlu2 %858 }
  0x87   : > { %v2292_v50 = vpop.permute.xlu0 %823  ;;  %v2294_v51 = vpop.permute.xlu1 %833 }
  0x88   : > { %v869_v60 = vpop.permute.xlu2 %868 }
  0x8f   : > { %v2298_v53 = vpop.permute.xlu0 %828  ;;  %v2300_v54 = vpop.permute.xlu1 %838 }
  0x90   : > { %v884_v16 = vpop.permute.xlu2 %883 }
  0x94   : > { %v619_v57 = vpop.f32.mrf.mxu0 }
  0x95   : > { %v692_v58 = vmul.f32 %v2305_v55, %v619_v57  ;;  %v649_v59 = vpop.f32.mrf.mxu1 }
  0x96   : > { %v702_v61 = vmul.f32 %v2305_v55, %v649_v59 }
  0x97   : > { %v719_v62 = vadd.f32 %v2310_v56, %v692_v58  ;;  %v2316_v0 = vpop.permute.xlu0 %843  ;;  %v2318_v1 = vpop.permute.xlu1 %848 }
  0x98   : > { %v729_v63 = vadd.f32 %v2310_v56, %v702_v61  ;;  %v904_v58 = vpop.permute.xlu2 %903 }
  0x99   : > { %v742_v2 = vmax.f32 %v719_v62, 0.0 }
  0x9a   : > { %v670_v3 = vpop.f32.mrf.mxu3  ;;  %v752_v4 = vmax.f32 %v729_v63, 0.0 }
  0x9b   : > { %v765_v5 = vmin.f32 %v742_v2, 6.0  ;;  %v661_v6 = vpop.f32.mrf.mxu2  ;;  %v709_v40 = vmul.f32 %v2305_v55, %v670_v3 }
  0x9c   : > { %v622_v7 = vpop.f32.mrf.mxu0  ;;  %v706_v8 = vmul.f32 %v2305_v55, %v661_v6  ;;  %v775_v12 = vmin.f32 %v752_v4, 6.0 }
  0x9d   : > { %v926_v9 = vmul.f32 %v814_v48, %v765_v5  ;;  %v693_v10 = vmul.f32 %v2305_v55, %v622_v7  ;;  %v652_v11 = vpop.f32.mrf.mxu1  ;;  %v736_v59 = vadd.f32 %v2310_v56, %v709_v40  ;;  %v2350_v5 = vld [vmem:[%s2956_s5] sm:$0xff] }
  0x9e   : > { %v703_v13 = vmul.f32 %v2305_v55, %v652_v11  ;;  %v733_v14 = vadd.f32 %v2310_v56, %v706_v8 }
  0x9f   : > { %950 = vst.msk [vmem:[#allocation2] sm:$0xff] %vm949_vm2, %v926_v9  ;;  %v720_v15 = vadd.f32 %v2310_v56, %v693_v10  ;;  %v864_v18 = vpop.permute.xlu0 %863  ;;  %v2327_v19 = vpop.permute.xlu1 %853 }
  0xa0   : > { %v730_v17 = vadd.f32 %v2310_v56, %v703_v13  ;;  %v756_v20 = vmax.f32 %v733_v14, 0.0  ;;  %v936_v22 = vmul.f32 %v864_v18, %v775_v12  ;;  %v2359_v14 = vperm.slane %v2350_v5, 1 }
  0xa1   : > { %v743_v21 = vmax.f32 %v720_v15, 0.0  ;;  %v759_v15 = vmax.f32 %v736_v59, 0.0 }
  0xa2   : > { %v673_v23 = vpop.f32.mrf.mxu3  ;;  %v753_v24 = vmax.f32 %v730_v17, 0.0  ;;  %v779_v25 = vmin.f32 %v756_v20, 6.0  ;;  %960 = vst.msk [vmem:[#allocation2 + $0x50] sm:$0xff] %vm949_vm2, %v936_v22 }
  0xa3   : > { %v766_v26 = vmin.f32 %v743_v21, 6.0  ;;  %v710_v27 = vmul.f32 %v2305_v55, %v673_v23  ;;  %v664_v28 = vpop.f32.mrf.mxu2 }
  0xa4   : > { %v625_v29 = vpop.f32.mrf.mxu0  ;;  %v707_v30 = vmul.f32 %v2305_v55, %v664_v28  ;;  %v776_v31 = vmin.f32 %v753_v24, 6.0  ;;  %v940_v32 = vmul.f32 %v884_v16, %v779_v25  ;;  %v2364_v16 = vperm.slane %v2350_v5, 0 }
  0xa5   : > { %v927_v33 = vmul.f32 %v819_v49, %v766_v26  ;;  %v737_v34 = vadd.f32 %v2310_v56, %v710_v27  ;;  %v694_v35 = vmul.f32 %v2305_v55, %v625_v29  ;;  %v655_v36 = vpop.f32.mrf.mxu1 }
  0xa6   : > { %v704_v37 = vmul.f32 %v2305_v55, %v655_v36  ;;  %v734_v38 = vadd.f32 %v2310_v56, %v707_v30  ;;  %v937_v39 = vmul.f32 %v869_v60, %v776_v31  ;;  %964 = vst.msk [vmem:[#allocation2 + $0x70] sm:$0xff] %vm949_vm2, %v940_v32  ;;  %v983_v23 = vld [vmem:[#allocation2] sm:$0xff]  ;;  %v782_v36 = vmin.f32 %v759_v15, 6.0 }
  0xa7   : > { %951 = vst.msk [vmem:[#allocation2 + $0x8] sm:$0xff] %vm949_vm2, %v927_v33  ;;  %v721_v41 = vadd.f32 %v2310_v56, %v694_v35  ;;  %v760_v42 = vmax.f32 %v737_v34, 0.0  ;;  %v874_v44 = vpop.permute.xlu0 %873  ;;  %v2342_v45 = vpop.permute.xlu1 %878  ;;  %v2374_v33 = vperm.slane %v2350_v5, 2 }
  0xa8   : > { %v731_v43 = vadd.f32 %v2310_v56, %v704_v37  ;;  %961 = vst.msk [vmem:[#allocation2 + $0x58] sm:$0xff] %vm949_vm2, %v937_v39  ;;  %v757_v47 = vmax.f32 %v734_v38, 0.0  ;;  %v986_v37 = vmul.f32 %v2364_v16, %v983_v23 }
  0xa9   : > { %v744_v46 = vmax.f32 %v721_v41, 0.0  ;;  %v783_v48 = vmin.f32 %v760_v42, 6.0  ;;  %v2368_v27 = vld [vmem:[#allocation2 + $0x50] sm:$0xff] }
  0xaa   : > { %v754_v49 = vmax.f32 %v731_v43, 0.0  ;;  %v676_v57 = vpop.f32.mrf.mxu3  ;;  %v780_v10 = vmin.f32 %v757_v47, 6.0  ;;  %v1417_v41 = vmul.f32 %v2368_v27, %v2364_v16 }
  0xab   : > { %v767_v60 = vmin.f32 %v744_v46, 6.0  ;;  %v711_v61 = vmul.f32 %v2305_v55, %v676_v57  ;;  %v667_v62 = vpop.f32.mrf.mxu2  ;;  %v944_v63 = vmul.f32 %v904_v58, %v783_v48 }
  0xac   : > { %v777_v2 = vmin.f32 %v754_v49, 6.0  ;;  %v628_v3 = vpop.f32.mrf.mxu0  ;;  %v708_v4 = vmul.f32 %v2305_v55, %v667_v62 }
  0xad   : > { %v928_v6 = vmul.f32 %v2292_v50, %v767_v60  ;;  %v738_v7 = vadd.f32 %v2310_v56, %v711_v61  ;;  %v695_v8 = vmul.f32 %v2305_v55, %v628_v3  ;;  %v658_v9 = vpop.f32.mrf.mxu1  ;;  %968 = vst.msk [vmem:[#allocation2 + $0x90] sm:$0xff] %vm949_vm2, %v944_v63  ;;  %v2391_v60 = vperm.slane %v2350_v5, 3  ;;  %v914_v61 = vpop.permute.xlu2 %913 }
  0xae   : > { %v938_v11 = vmul.f32 %v874_v44, %v777_v2  ;;  %v705_v12 = vmul.f32 %v2305_v55, %v658_v9  ;;  %v735_v13 = vadd.f32 %v2310_v56, %v708_v4  ;;  %v990_v17 = vld [vmem:[#allocation2 + $0x1] sm:$0xff]  ;;  %v2396_v63 = vperm.slane %v2350_v5, 6 }
  0xaf   : > { %952 = vst.msk [vmem:[#allocation2 + $0x10] sm:$0xff] %vm949_vm2, %v928_v6  ;;  %v722_v50 = vadd.f32 %v2310_v56, %v695_v8  ;;  %v889_v20 = vpop.permute.xlu0 %888  ;;  %v894_v21 = vpop.permute.xlu1 %893  ;;  %v761_v26 = vmax.f32 %v738_v7, 0.0  ;;  %v2370_v28 = vld [vmem:[#allocation2 + $0x51] sm:$0xff]  ;;  %v993_v32 = vmul.f32 %v2359_v14, %v990_v17  ;;  %v997_v48 = vld [vmem:[#allocation2 + $0x2] sm:$0xff]  ;;  %v2399_v2 = vperm.slane %v2350_v5, 7 }
  0xb0   : > { %962 = vst.msk [vmem:[#allocation2 + $0x60] sm:$0xff] %vm949_vm2, %v938_v11  ;;  %v732_v18 = vadd.f32 %v2310_v56, %v705_v12  ;;  %v758_v22 = vmax.f32 %v735_v13, 0.0  ;;  %v941_v25 = vmul.f32 %v889_v20, %v780_v10  ;;  %v1423_v42 = vmul.f32 %v2370_v28, %v2359_v14  ;;  %v984_v49 = vld [vmem:[#allocation2 + $0x8] sm:$0xff]  ;;  %v2386_v57 = vld [vmem:[#allocation2 + $0x52] sm:$0xff] }
  0xb1   : > { %v745_v24 = vmax.f32 %v722_v50, 0.0  ;;  %v784_v47 = vmin.f32 %v761_v26, 6.0  ;;  %v995_v59 = vadd.f32 %v993_v32, %v986_v37  ;;  %v1000_v6 = vmul.f32 %v2374_v33, %v997_v48  ;;  %v2413_v50 = vld [vmem:[%s2959_s8 + $0x10] sm:$0xff] }
  0xb2   : > { %v755_v29 = vmax.f32 %v732_v18, 0.0  ;;  %v679_v30 = vpop.f32.mrf.mxu3  ;;  %v781_v31 = vmin.f32 %v758_v22, 6.0  ;;  %965 = vst.msk [vmem:[#allocation2 + $0x78] sm:$0xff] %vm949_vm2, %v941_v25  ;;  %v987_v7 = vmul.f32 %v2364_v16, %v984_v49  ;;  %v2404_v8 = vadd.f32 %v1423_v42, %v1417_v41  ;;  %1289 = vmatpush.msrb.mxu3 %v2413_v50  ;;  %1079 = vmatpush.msrb.mxu1 %v2413_v50  ;;  %v2425_v22 = vld [vmem:[%s2956_s5 + $0x8] ss:$0 sm:$0xff]  ;;  %v2460_v41 = vld [vmem:[%s2959_s8] sm:$0xff] }
  0xb3   : > { %v768_v34 = vmin.f32 %v745_v24, 6.0  ;;  %v712_v35 = vmul.f32 %v2305_v55, %v679_v30  ;;  %v2408_v9 = vmul.f32 %v2386_v57, %v2374_v33  ;;  %v2417_v20 = vadd.f32 %v1000_v6, %v995_v59  ;;  %v2437_v30 = vld [vmem:[%s2959_s8 + $0x8] sm:$0xff]  ;;  %1186 = vmatpush.msrb.mxu2 %v2413_v50 }
  0xb4   : > { %v778_v38 = vmin.f32 %v755_v29, 6.0  ;;  %v942_v39 = vmul.f32 %v894_v21, %v781_v31  ;;  %v631_v40 = vpop.f32.mrf.mxu0  ;;  %v2420_v21 = vperm.slane %v2350_v5, 4  ;;  %v2430_v24 = vmul.f32 %v2368_v27, %v2396_v63  ;;  %1080 = vmatpush.msrb.mxu1 %v2437_v30  ;;  %1290 = vmatpush.msrb.mxu3 %v2437_v30 }
  0xb5   : > { %v929_v43 = vmul.f32 %v2298_v53, %v768_v34  ;;  %v739_v44 = vadd.f32 %v2310_v56, %v712_v35  ;;  %v696_v46 = vmul.f32 %v2305_v55, %v631_v40  ;;  %v2442_v31 = vmul.f32 %v2370_v28, %v2399_v2  ;;  %1187 = vmatpush.msrb.mxu2 %v2437_v30 }
  0xb6   : > { %v939_v58 = vmul.f32 %v2342_v45, %v778_v38  ;;  %966 = vst.msk [vmem:[#allocation2 + $0x80] sm:$0xff] %vm949_vm2, %v942_v39  ;;  %v991_v3 = vld [vmem:[#allocation2 + $0x9] sm:$0xff]  ;;  %v2449_v35 = vmul.f32 %v2425_v22, %v2386_v57  ;;  %v2463_v42 = vperm.slane %v2350_v5, 5  ;;  %1081 = vmatpush.msrb.mxu1 %v2460_v41  ;;  %1291 = vmatpush.msrb.mxu3 %v2460_v41 }
  0xb7   : > { %953 = vst.msk [vmem:[#allocation2 + $0x18] sm:$0xff] %vm949_vm2, %v929_v43  ;;  %v723_v53 = vadd.f32 %v2310_v56, %v696_v46  ;;  %v762_v62 = vmax.f32 %v739_v44, 0.0  ;;  %v909_v45 = vpop.permute.xlu0 %908  ;;  %v899_v4 = vpop.permute.xlu1 %898  ;;  %v1347_v15 = vld [vmem:[#allocation2 + $0x5a] sm:$0xff]  ;;  %v994_v23 = vmul.f32 %v2359_v14, %v991_v3  ;;  %v998_v34 = vld [vmem:[#allocation2 + $0xa] sm:$0xff]  ;;  %v2470_v44 = vmul.f32 %v2368_v27, %v2391_v60  ;;  %1188 = vmatpush.msrb.mxu2 %v2460_v41 }
  0xb8   : > { %963 = vst.msk [vmem:[#allocation2 + $0x68] sm:$0xff] %vm949_vm2, %v939_v58  ;;  %v945_v11 = vmul.f32 %v909_v45, %v784_v47  ;;  %v943_v12 = vmul.f32 %v899_v4, %v782_v36  ;;  %v1353_v17 = vld [vmem:[#allocation2 + $0x5b] sm:$0xff]  ;;  %v1519_v36 = vmul.f32 %v1347_v15, %v2364_v16  ;;  %v2474_v46 = vmul.f32 %v2370_v28, %v2420_v21 }
  0xb9   : > { %v746_v10 = vmax.f32 %v723_v53, 0.0  ;;  %v785_v13 = vmin.f32 %v762_v62, 6.0  ;;  %2970 = vst [vmem:[#allocation3_spill] sm:$0xff] %v2449_v35  ;;  %v1525_v37 = vmul.f32 %v1353_v17, %v2359_v14  ;;  %v996_v43 = vadd.f32 %v994_v23, %v987_v7  ;;  %1495 = vmatpush.msra.mxu2 %v2413_v50  ;;  %1392 = vmatpush.msra.mxu1 %v2413_v50 }
  0xba   : > { %v682_v18 = vpop.f32.mrf.mxu3  ;;  %969 = vst.msk [vmem:[#allocation2 + $0x98] sm:$0xff] %vm949_vm2, %v945_v11  ;;  %v1001_v48 = vmul.f32 %v2374_v33, %v998_v34  ;;  %v2482_v49 = vmul.f32 %v2386_v57, %v2463_v42  ;;  %v2486_v28 = vmul.f32 %v1347_v15, %v2396_v63  ;;  %v2489_v59 = vmul.f32 %v1353_v17, %v2399_v2 }
  0xbb   : > { %v769_v25 = vmin.f32 %v746_v10, 6.0  ;;  %v713_v26 = vmul.f32 %v2305_v55, %v682_v18  ;;  %v946_v29 = vmul.f32 %v914_v61, %v785_v13  ;;  %967 = vst.msk [vmem:[#allocation2 + $0x88] sm:$0xff] %vm949_vm2, %v943_v12  ;;  %v2495_v61 = vmul.f32 %v1347_v15, %v2391_v60  ;;  %1598 = vmatpush.msra.mxu3 %v2413_v50 }
  0xbc   : > { %v634_v32 = vpop.f32.mrf.mxu0  ;;  %2971 = vst [vmem:[#allocation4_spill] sm:$0xff] %v2482_v49  ;;  %v1527_v45 = vadd.f32 %v1525_v37, %v1519_v36  ;;  %v1003_v10 = vadd.f32 %v1001_v48, %v996_v43  ;;  %1496 = vmatpush.msra.mxu2 %v2437_v30  ;;  %v2504_v11 = vmul.f32 %v1353_v17, %v2420_v21 }
  0xbd   : > { %v930_v38 = vmul.f32 %v2294_v51, %v769_v25  ;;  %v740_v39 = vadd.f32 %v2310_v56, %v713_v26  ;;  %v697_v40 = vmul.f32 %v2305_v55, %v634_v32  ;;  %970 = vst.msk [vmem:[#allocation2 + $0xa0] sm:$0xff] %vm949_vm2, %v946_v29  ;;  %v1359_v51 = vld [vmem:[#allocation2 + $0x5c] sm:$0xff]  ;;  %1393 = vmatpush.msra.mxu1 %v2437_v30 }
  0xbe   : > { %v1004_v27 = vld [vmem:[#allocation2 + $0x12] sm:$0xff]  ;;  %2972 = vst [vmem:[#allocation5_spill] sm:$0xff] %v2486_v28  ;;  %v2492_v53 = vmul.f32 %v2425_v22, %v1359_v51  ;;  %v1531_v4 = vmul.f32 %v1359_v51, %v2374_v33  ;;  %v2500_v6 = vld [vmem:[#allocation2 + $0x7e] sm:$0xff]  ;;  %v2507_v12 = vmul.f32 %v1359_v51, %v2463_v42  ;;  %1599 = vmatpush.msra.mxu3 %v2437_v30 }
  0xbf   : > { %954 = vst.msk [vmem:[#allocation2 + $0x20] sm:$0xff] %vm949_vm2, %v930_v38  ;;  %v724_v5 = vadd.f32 %v2310_v56, %v697_v40  ;;  %v763_v47 = vmax.f32 %v740_v39, 0.0  ;;  %v919_v58 = vpop.permute.xlu0 %918  ;;  %v1011_v57 = vld [vmem:[#allocation2 + $0x13] sm:$0xff]  ;;  %v2511_v13 = vmul.f32 %v2500_v6, %v2396_v63  ;;  %v1007_v25 = vmul.f32 %v2391_v60, %v1004_v27  ;;  %v2517_v17 = vld [vmem:[#allocation2 + $0x7f] sm:$0xff]  ;;  %1497 = vmatpush.msra.mxu2 %v2460_v41 }
  0xc0   : > { %2973 = vst [vmem:[#allocation6_spill] sm:$0xff] %v2489_v59  ;;  %v1018_v26 = vld [vmem:[#allocation2 + $0x14] sm:$0xff]  ;;  %v1014_v32 = vmul.f32 %v2420_v21, %v1011_v57  ;;  %v1107_v34 = vmul.f32 %v1004_v27, %v2364_v16  ;;  %v1113_v36 = vmul.f32 %v1011_v57, %v2359_v14  ;;  %v2525_v37 = vmul.f32 %v2517_v17, %v2399_v2  ;;  %v2531_v43 = vld [vmem:[#allocation2 + $0x6c] sm:$0xff] }
  0xc1   : > { %2974 = vst [vmem:[#allocation7_spill] sm:$0xff] %v2492_v53  ;;  %v747_v62 = vmax.f32 %v724_v5, 0.0  ;;  %v786_v3 = vmin.f32 %v763_v47, 6.0  ;;  %v1533_v51 = vadd.f32 %v1531_v4, %v1527_v45  ;;  %v1021_v5 = vmul.f32 %v2463_v42, %v1018_v26  ;;  %1394 = vmatpush.msra.mxu1 %v2460_v41  ;;  %1600 = vmatpush.msra.mxu3 %v2460_v41  ;;  %v2543_v45 = vld [vmem:[#allocation2 + $0x6d] sm:$0xff]  ;;  %v2545_v4 = vld [vmem:[#allocation2 + $0x62] sm:$0xff] }
  0xc2   : > { %2975 = vst [vmem:[#allocation8_spill] sm:$0xff] %v2495_v61  ;;  %v685_v7 = vpop.f32.mrf.mxu3  ;;  %v1119_v48 = vmul.f32 %v1018_v26, %v2374_v33  ;;  %v1622_v61 = vmul.f32 %v2531_v43, %v2364_v16 }
  0xc3   : > { %2976 = vst [vmem:[#allocation9_spill] sm:$0xff] %v2504_v11  ;;  %v770_v15 = vmin.f32 %v747_v62, 6.0  ;;  %v947_v18 = vmul.f32 %v919_v58, %v786_v3  ;;  %v714_v23 = vmul.f32 %v2305_v55, %v685_v7  ;;  %v1009_v62 = vadd.f32 %v1007_v25, %v2417_v20  ;;  %v924_v7 = vpop.permute.xlu1 %923  ;;  %v2606_v11 = vld [vmem:[#allocation2 + $0x74] sm:$0xff] }
  0xc4   : > { %2977 = vst [vmem:[#allocation10_spill] sm:$0xff] %v2507_v12  ;;  %v637_v29 = vpop.f32.mrf.mxu0  ;;  %v1543_v20 = vmul.f32 %v2543_v45, %v2420_v21 }
  0xc5   : > { %v931_v38 = vmul.f32 %v2300_v54, %v770_v15  ;;  %971 = vst.msk [vmem:[#allocation2 + $0xa8] sm:$0xff] %vm949_vm2, %v947_v18  ;;  %v741_v39 = vadd.f32 %v2310_v56, %v714_v23  ;;  %v698_v40 = vmul.f32 %v2305_v55, %v637_v29  ;;  %v1537_v54 = vmul.f32 %v2531_v43, %v2391_v60 }
  0xc6   : > { %v1005_v47 = vld [vmem:[#allocation2 + $0x1a] sm:$0xff]  ;;  %v1115_v15 = vadd.f32 %v1113_v36, %v1107_v34  ;;  %v2549_v18 = vmul.f32 %v2531_v43, %v2396_v63  ;;  %v2553_v23 = vmul.f32 %v2543_v45, %v2399_v2  ;;  %v2559_v34 = vld [vmem:[#allocation2 + $0x6e] sm:$0xff]  ;;  %v1431_v36 = vadd.f32 %v2408_v9, %v2404_v8  ;;  %2984 = vst [vmem:[#allocation17_spill] sm:$0xff] %v2606_v11 }
  0xc7   : > { %955 = vst.msk [vmem:[#allocation2 + $0x28] sm:$0xff] %vm949_vm2, %v931_v38  ;;  %v725_v58 = vadd.f32 %v2310_v56, %v698_v40  ;;  %v764_v27 = vmax.f32 %v741_v39, 0.0  ;;  %v1008_v3 = vmul.f32 %v2391_v60, %v1005_v47  ;;  %v1012_v57 = vld [vmem:[#allocation2 + $0x1b] sm:$0xff]  ;;  %v1108_v29 = vmul.f32 %v1005_v47, %v2364_v16  ;;  %v2569_v47 = vld [vmem:[#allocation2 + $0x63] sm:$0xff] }
  0xc8   : > { %2978 = vst [vmem:[#allocation11_spill] sm:$0xff] %v2549_v18  ;;  %v1539_v38 = vadd.f32 %v1537_v54, %v1533_v51  ;;  %v1114_v40 = vmul.f32 %v1012_v57, %v2359_v14  ;;  %v1435_v18 = vmul.f32 %v2545_v4, %v2391_v60  ;;  %v1016_v12 = vadd.f32 %v1014_v32, %v1009_v62  ;;  %v1019_v62 = vld [vmem:[#allocation2 + $0x1c] sm:$0xff] }
  0xc9   : > { %2979 = vst [vmem:[#allocation12_spill] sm:$0xff] %v2553_v23  ;;  %v748_v25 = vmax.f32 %v725_v58, 0.0  ;;  %v787_v26 = vmin.f32 %v764_v27, 6.0  ;;  %v1010_v39 = vadd.f32 %v1008_v3, %v1003_v10  ;;  %v2567_v58 = vmul.f32 %v2425_v22, %v2559_v34 }
  0xca   : > { %v1015_v51 = vmul.f32 %v2420_v21, %v1012_v57  ;;  %v2574_v54 = vmul.f32 %v2545_v4, %v2396_v63  ;;  %v1545_v8 = vadd.f32 %v1543_v20, %v1539_v38  ;;  %v1549_v9 = vmul.f32 %v2559_v34, %v2463_v42  ;;  %v2585_v20 = vld [vmem:[#allocation2 + $0x64] sm:$0xff] }
  0xcb   : > { %v771_v23 = vmin.f32 %v748_v25, 6.0  ;;  %v948_v53 = vmul.f32 %v924_v7, %v787_v26  ;;  %2980 = vst [vmem:[#allocation13_spill] sm:$0xff] %v2567_v58  ;;  %v1121_v3 = vadd.f32 %v1119_v48, %v1115_v15  ;;  %v2583_v7 = vmul.f32 %v2569_v47, %v2399_v2 }
  0xcc   : > { %v640_v10 = vpop.f32.mrf.mxu0  ;;  %2981 = vst [vmem:[#allocation14_spill] sm:$0xff] %v2574_v54  ;;  %v1017_v26 = vadd.f32 %v1015_v51, %v1010_v39  ;;  %v1116_v58 = vadd.f32 %v1114_v40, %v1108_v29  ;;  %v1437_v38 = vadd.f32 %v1435_v18, %v1431_v36  ;;  %v2594_v15 = vmul.f32 %v2425_v22, %v2585_v20  ;;  %v2599_v36 = vld [vmem:[#allocation2 + $0x80] sm:$0xff] }
  0xcd   : > { %v932_v27 = vmul.f32 %v2316_v0, %v771_v23  ;;  %973 = vst.msk [vmem:[#allocation2 + $0xb0] sm:$0xf] %vm972_vm3, %v948_v53  ;;  %v699_v32 = vmul.f32 %v2305_v55, %v640_v10  ;;  %v1441_v0 = vmul.f32 %v2569_v47, %v2420_v21  ;;  %v1023_v23 = vadd.f32 %v1021_v5, %v1016_v12 }
  0xce   : > { %2982 = vst [vmem:[#allocation15_spill] sm:$0xff] %v2583_v7  ;;  %v1025_v57 = vld [vmem:[#allocation2 + $0x24] sm:$0xff]  ;;  %v1022_v29 = vmul.f32 %v2463_v42, %v1019_v62  ;;  %v1120_v18 = vmul.f32 %v1019_v62, %v2374_v33  ;;  %v1551_v40 = vadd.f32 %v1549_v9, %v1545_v8  ;;  %v1567_v5 = vmul.f32 %v2425_v22, %v2599_v36 }
  0xcf   : > { %v1032_v25 = vld [vmem:[#allocation2 + $0x25] sm:$0xff]  ;;  %956 = vst.msk [vmem:[#allocation2 + $0x30] sm:$0xff] %vm949_vm2, %v932_v27  ;;  %v726_v53 = vadd.f32 %v2310_v56, %v699_v32  ;;  %v1028_v48 = vmul.f32 %v2396_v63, %v1025_v57  ;;  %v1125_v39 = vmul.f32 %v1025_v57, %v2391_v60  ;;  %v1447_v59 = vmul.f32 %v2585_v20, %v2463_v42 }
  0xd0   : > { %2983 = vst [vmem:[#allocation16_spill] sm:$0xff] %v2594_v15  ;;  %v1039_v10 = vld [vmem:[#allocation2 + $0x26] sm:$0xff]  ;;  %v1035_v12 = vmul.f32 %v2399_v2, %v1032_v25  ;;  %v1024_v32 = vadd.f32 %v1022_v29, %v1017_v26  ;;  %v1122_v7 = vadd.f32 %v1120_v18, %v1116_v58  ;;  %v1443_v15 = vadd.f32 %v1441_v0, %v1437_v38  ;;  %v2614_v38 = vld [vmem:[#allocation2 + $0x75] sm:$0xff] }
  0xd1   : > { %v749_v51 = vmax.f32 %v726_v53, 0.0  ;;  %v1030_v27 = vadd.f32 %v1028_v48, %v1023_v23  ;;  %v1042_v8 = vmul.f32 %v2425_v22, %v1039_v10  ;;  %v1453_v9 = vmul.f32 %v2606_v11, %v2396_v63  ;;  %2985 = vst [vmem:[#allocation18_spill] sm:$0xff] %v2614_v38 }
  0xd2   : > { %v1127_v23 = vadd.f32 %v1125_v39, %v1121_v3  ;;  %v1210_v48 = vmul.f32 %v1025_v57, %v2364_v16  ;;  %v1216_v26 = vmul.f32 %v1032_v25, %v2359_v14  ;;  %v1557_v58 = vadd.f32 %v2511_v13, %v1551_v40  ;;  %v2625_v57 = vld [vmem:[#allocation2 + $0x76] sm:$0xff] }
  0xd3   : > { %v772_v54 = vmin.f32 %v749_v51, 6.0  ;;  %v1037_v62 = vadd.f32 %v1035_v12, %v1030_v27  ;;  %v2621_v51 = vld [vmem:[%s2957_s6] ss:$0 sm:$0xff]  ;;  %v1459_v3 = vmul.f32 %v2614_v38, %v2399_v2  ;;  %2986 = vst [vmem:[#allocation19_spill] sm:$0xff] %v2625_v57  ;;  %v1131_v13 = vmul.f32 %v1032_v25, %v2420_v21 }
  0xd4   : > { %v643_v53 = vpop.f32.mrf.mxu0  ;;  %v1137_v40 = vmul.f32 %v1039_v10, %v2463_v42 }
  0xd5   : > { %v933_v0 = vmul.f32 %v2318_v1, %v772_v54  ;;  %v700_v29 = vmul.f32 %v2305_v55, %v643_v53  ;;  %v1044_v18 = vadd.f32 %v1042_v8, %v1037_v62  ;;  %v1449_v1 = vadd.f32 %v1447_v59, %v1443_v15  ;;  %v2639_v8 = vld [vmem:[%s2958_s7] ss:$0 sm:$0xff] }
  0xd6   : > { %v1026_v39 = vld [vmem:[#allocation2 + $0x2c] sm:$0xff]  ;;  %v2631_v54 = vmul.f32 %v2425_v22, %v2625_v57  ;;  %v1222_v53 = vmul.f32 %v1039_v10, %v2374_v33  ;;  %v1133_v15 = vadd.f32 %v1131_v13, %v1127_v23  ;;  %v1628_v10 = vmul.f32 %v2543_v45, %v2359_v14 }
  0xd7   : > { %v1033_v27 = vld [vmem:[#allocation2 + $0x2d] sm:$0xff]  ;;  %957 = vst.msk [vmem:[#allocation2 + $0x38] sm:$0xff] %vm949_vm2, %v933_v0  ;;  %v727_v12 = vadd.f32 %v2310_v56, %v700_v29  ;;  %v1049_v62 = vmul.f32 %v2621_v51, %v1044_v18  ;;  %v1029_v25 = vmul.f32 %v2396_v63, %v1026_v39  ;;  %v1126_v57 = vmul.f32 %v1026_v39, %v2391_v60 }
  0xd8   : > { %2987 = vst [vmem:[#allocation20_spill] sm:$0xff] %v2631_v54  ;;  %v1040_v59 = vld [vmem:[#allocation2 + $0x2e] sm:$0xff]  ;;  %v1218_v54 = vadd.f32 %v1216_v26, %v1210_v48  ;;  %v1563_v0 = vadd.f32 %v2525_v37, %v1557_v58  ;;  %v1036_v28 = vmul.f32 %v2399_v2, %v1033_v27  ;;  %v1455_v11 = vadd.f32 %v1453_v9, %v1449_v1 }
  0xd9   : > { %v750_v38 = vmax.f32 %v727_v12, 0.0  ;;  %v1054_v29 = vadd.f32 %v2639_v8, %v1049_v62  ;;  %v1031_v18 = vadd.f32 %v1029_v25, %v1024_v32  ;;  %v1634_v23 = vmul.f32 %v2559_v34, %v2374_v33 }
  0xda   : > { %v1043_v37 = vmul.f32 %v2425_v22, %v1040_v59  ;;  %v1139_v12 = vadd.f32 %v1137_v40, %v1133_v15  ;;  %v1128_v32 = vadd.f32 %v1126_v57, %v1122_v7  ;;  %v1224_v62 = vadd.f32 %v1222_v53, %v1218_v54 }
  0xdb   : > { %v773_v13 = vmin.f32 %v750_v38, 6.0  ;;  %v1056_v48 = vmax.f32 %v1054_v29, 0.0  ;;  %v1038_v26 = vadd.f32 %v1036_v28, %v1031_v18  ;;  %v1569_v25 = vadd.f32 %v1567_v5, %v1563_v0 }
  0xdc   : > { %v646_v58 = vpop.f32.mrf.mxu0  ;;  %v1132_v34 = vmul.f32 %v1033_v27, %v2420_v21  ;;  %v1211_v38 = vmul.f32 %v1026_v39, %v2364_v16  ;;  %v1217_v28 = vmul.f32 %v1033_v27, %v2359_v14  ;;  %v2659_v29 = vadd.f32 %v1459_v3, %v1455_v11 }
  0xdd   : > { %v934_v9 = vmul.f32 %v2327_v19, %v773_v13  ;;  %v701_v43 = vmul.f32 %v2305_v55, %v646_v58  ;;  %v1058_v1 = vmin.f32 %v1056_v48, 6.0  ;;  %v1045_v49 = vadd.f32 %v1043_v37, %v1038_v26 }
  0xde   : > { %v1141_v45 = vld [vmem:[#allocation2 + $0x36] sm:$0xff]  ;;  %v1134_v57 = vadd.f32 %v1132_v34, %v1128_v32  ;;  %v1138_v40 = vmul.f32 %v1040_v59, %v2463_v42  ;;  %v1630_v11 = vadd.f32 %v1628_v10, %v1622_v61  ;;  %v1219_v0 = vadd.f32 %v1217_v28, %v1211_v38 }
  0xdf   : > { %v1147_v35 = vld [vmem:[#allocation2 + $0x37] sm:$0xff]  ;;  %958 = vst.msk [vmem:[#allocation2 + $0x40] sm:$0xff] %vm949_vm2, %v934_v9  ;;  %v728_v7 = vadd.f32 %v2310_v56, %v701_v43  ;;  %1967 = vmatmul.msk.f32.vlgmr.msrb.gmra.mxu1 %vm949_vm2, %v1058_v1  ;;  %v1050_v55 = vmul.f32 %v2621_v51, %v1045_v49  ;;  %v1143_v19 = vmul.f32 %v1141_v45, %v2396_v63 }
  0xe0   : > { %v1153_v5 = vld [vmem:[#allocation2 + $0x38] sm:$0xff]  ;;  %v1228_v39 = vmul.f32 %v1141_v45, %v2391_v60  ;;  %1701 = vmatpush.msrb.mxu1 %v2413_v50  ;;  %v1149_v56 = vmul.f32 %v1147_v35, %v2399_v2  ;;  %v1313_v15 = vmul.f32 %v1141_v45, %v2364_v16  ;;  %v1319_v26 = vmul.f32 %v1147_v35, %v2359_v14 }
  0xe1   : > { %v751_v3 = vmax.f32 %v728_v7, 0.0  ;;  %v1055_v27 = vadd.f32 %v2639_v8, %v1050_v55  ;;  %v1145_v54 = vadd.f32 %v1143_v19, %v1139_v12  ;;  %v1155_v53 = vmul.f32 %v2425_v22, %v1153_v5 }
  0xe2   : > { %v1230_v49 = vadd.f32 %v1228_v39, %v1224_v62  ;;  %1702 = vmatpush.msrb.mxu1 %v2437_v30  ;;  %v1234_v61 = vmul.f32 %v1147_v35, %v2420_v21  ;;  %v1223_v10 = vmul.f32 %v1040_v59, %v2374_v33  ;;  %v1636_v37 = vadd.f32 %v1634_v23, %v1630_v11 }
  0xe3   : > { %v774_v18 = vmin.f32 %v751_v3, 6.0  ;;  %v1057_v13 = vmax.f32 %v1055_v27, 0.0  ;;  %v1151_v48 = vadd.f32 %v1149_v56, %v1145_v54  ;;  %v1640_v58 = vmul.f32 %v2500_v6, %v2391_v60 }
  0xe4   : > { %1703 = vmatpush.msrb.mxu1 %v2460_v41  ;;  %v2682_v9 = vmul.f32 %v2621_v51, %v1569_v25  ;;  %v1140_v43 = vadd.f32 %v1138_v40, %v1134_v57  ;;  %v1236_v34 = vadd.f32 %v1234_v61, %v1230_v49  ;;  %v1240_v35 = vmul.f32 %v1153_v5, %v2463_v42 }
  0xe5   : > { %v935_v12 = vmul.f32 %v2296_v52, %v774_v18  ;;  %v1059_v32 = vmin.f32 %v1057_v13, 6.0  ;;  %v1157_v62 = vadd.f32 %v1155_v53, %v1151_v48  ;;  %v1225_v59 = vadd.f32 %v1223_v10, %v1219_v0 }
  0xe6   : > { %v1142_v1 = vld [vmem:[#allocation2 + $0x3e] sm:$0xff]  ;;  %v1321_v38 = vadd.f32 %v1319_v26, %v1313_v15  ;;  %v1642_v55 = vadd.f32 %v1640_v58, %v1636_v37  ;;  %v1646_v19 = vmul.f32 %v2517_v17, %v2420_v21  ;;  %v1242_v3 = vadd.f32 %v1240_v35, %v1236_v34  ;;  %v2703_v58 = vld [vmem:[#allocation2 + $0x90] sm:$0xff] }
  0xe7   : > { %v1148_v45 = vld [vmem:[#allocation2 + $0x3f] sm:$0xff]  ;;  %959 = vst.msk [vmem:[#allocation2 + $0x48] sm:$0xff] %vm949_vm2, %v935_v12  ;;  %1968 = vmatmul.msk.f32.gmra.mxu1 %vm949_vm2, %v1059_v32  ;;  %v1159_v23 = vmul.f32 %v2621_v51, %v1157_v62  ;;  %v1144_v52 = vmul.f32 %v1142_v1, %v2396_v63  ;;  %v1229_v7 = vmul.f32 %v1142_v1, %v2391_v60 }
  0xe8   : > { %v1150_v28 = vmul.f32 %v1148_v45, %v2399_v2  ;;  %v1154_v25 = vld [vmem:[#allocation2 + $0x40] sm:$0xff]  ;;  %v1314_v39 = vmul.f32 %v1142_v1, %v2364_v16  ;;  %v1320_v11 = vmul.f32 %v1148_v45, %v2359_v14  ;;  %v1325_v27 = vmul.f32 %v1153_v5, %v2374_v33 }
  0xe9   : > { %v1161_v57 = vadd.f32 %v2639_v8, %v1159_v23  ;;  %v1146_v40 = vadd.f32 %v1144_v52, %v1140_v43  ;;  %v1231_v54 = vadd.f32 %v1229_v7, %v1225_v59  ;;  %v1235_v56 = vmul.f32 %v1148_v45, %v2420_v21 }
  0xea   : > { %v1156_v15 = vmul.f32 %v2425_v22, %v1154_v25  ;;  %v1322_v0 = vadd.f32 %v1320_v11, %v1314_v39  ;;  %v1327_v18 = vadd.f32 %v1325_v27, %v1321_v38  ;;  %v1241_v48 = vmul.f32 %v1154_v25, %v2463_v42 }
  0xeb   : > { %v1163_v53 = vmax.f32 %v1161_v57, 0.0  ;;  %v1152_v49 = vadd.f32 %v1150_v28, %v1146_v40  ;;  %v1237_v13 = vadd.f32 %v1235_v56, %v1231_v54  ;;  %v1326_v26 = vmul.f32 %v1154_v25, %v2374_v33 }
  0xec   : > { %v1648_v37 = vadd.f32 %v1646_v19, %v1642_v55  ;;  %v1652_v5 = vmul.f32 %v2599_v36, %v2463_v42  ;;  %v1658_v45 = vmul.f32 %v2703_v58, %v2396_v63  ;;  %v1520_v34 = vmul.f32 %v2545_v4, %v2364_v16 }
  0xed   : > { %v1165_v61 = vmin.f32 %v1163_v53, 6.0  ;;  %v1158_v10 = vadd.f32 %v1156_v15, %v1152_v49  ;;  %v1243_v43 = vadd.f32 %v1241_v48, %v1237_v13  ;;  %v1328_v1 = vadd.f32 %v1326_v26, %v1322_v0 }
  0xee   : > { %v1244_v12 = vld [vmem:[#allocation2 + $0x48] sm:$0xff]  ;;  %v1526_v23 = vmul.f32 %v2569_v47, %v2359_v14  ;;  %v1532_v52 = vmul.f32 %v2585_v20, %v2374_v33  ;;  %v1654_v48 = vadd.f32 %v1652_v5, %v1648_v37  ;;  %v2994_v5 = vld [vmem:[#allocation18_spill] sm:$0xff] }
  0xef   : > { %v1250_v32 = vld [vmem:[#allocation2 + $0x49] sm:$0xff]  ;;  %1969 = vmatmul.msk.f32.vlgmr.msrb.gmra.mxu2 %vm949_vm2, %v1165_v61  ;;  %v1160_v35 = vmul.f32 %v2621_v51, %v1158_v10  ;;  %v1246_v59 = vmul.f32 %v1244_v12, %v2396_v63  ;;  %v1331_v25 = vmul.f32 %v1244_v12, %v2391_v60  ;;  %v1249_v4 = vadd.f32 %v2430_v24, %v1243_v43  ;;  %v2990_v10 = vld [vmem:[#allocation8_spill] sm:$0xff] }
  0xf0   : > { %v1256_v62 = vld [vmem:[#allocation2 + $0x4a] sm:$0xff]  ;;  %v1252_v38 = vmul.f32 %v1250_v32, %v2399_v2  ;;  %1804 = vmatpush.msrb.mxu2 %v2413_v50  ;;  %v1416_v19 = vmul.f32 %v1244_v12, %v2364_v16  ;;  %v1422_v47 = vmul.f32 %v1250_v32, %v2359_v14  ;;  %v1337_v20 = vmul.f32 %v1250_v32, %v2420_v21 }
  0xf1   : > { %v1258_v28 = vmul.f32 %v2425_v22, %v1256_v62  ;;  %v1162_v7 = vadd.f32 %v2639_v8, %v1160_v35  ;;  %v1248_v55 = vadd.f32 %v1246_v59, %v1242_v3  ;;  %v1333_v57 = vadd.f32 %v1331_v25, %v1327_v18  ;;  %v2991_v32 = vld [vmem:[#allocation17_spill] sm:$0xff]  ;;  %v2996_v25 = vld [vmem:[#allocation6_spill] sm:$0xff] }
  0xf2   : > { %v1255_v40 = vadd.f32 %v2442_v31, %v1249_v4  ;;  %v1334_v39 = vadd.f32 %v2470_v44, %v1328_v1  ;;  %1805 = vmatpush.msrb.mxu2 %v2437_v30  ;;  %v1424_v27 = vadd.f32 %v1422_v47, %v1416_v19  ;;  %v1428_v50 = vmul.f32 %v1256_v62, %v2374_v33  ;;  %v2988_v31 = vld [vmem:[#allocation3_spill] sm:$0xff]  ;;  %v2989_v30 = vld [vmem:[#allocation4_spill] sm:$0xff]  ;;  %v2992_v43 = vld [vmem:[#allocation5_spill] sm:$0xff] }
  0xf3   : > { %v1164_v11 = vmax.f32 %v1162_v7, 0.0  ;;  %v1254_v24 = vadd.f32 %v1252_v38, %v1248_v55  ;;  %v1339_v54 = vadd.f32 %v1337_v20, %v1333_v57  ;;  %v1343_v3 = vmul.f32 %v1256_v62, %v2463_v42  ;;  %v2995_v38 = vld [vmem:[#allocation9_spill] sm:$0xff]  ;;  %v2997_v7 = vld [vmem:[#allocation15_spill] sm:$0xff] }
  0xf4   : > { %v1340_v56 = vadd.f32 %v2474_v46, %v1334_v39  ;;  %1806 = vmatpush.msrb.mxu2 %v2460_v41  ;;  %v1528_v53 = vadd.f32 %v1526_v23, %v1520_v34  ;;  %v1261_v0 = vadd.f32 %v2988_v31, %v1255_v40  ;;  %v1430_v44 = vadd.f32 %v1428_v50, %v1424_v27  ;;  %v1662_v46 = vld [vmem:[#allocation2 + $0x91] sm:$0xff]  ;;  %v2756_v50 = vld [vmem:[#allocation2 + $0x86] sm:$0xff] }
  0xf5   : > { %v1166_v49 = vmin.f32 %v1164_v11, 6.0  ;;  %v1260_v15 = vadd.f32 %v1258_v28, %v1254_v24  ;;  %v1345_v18 = vadd.f32 %v1343_v3, %v1339_v54  ;;  %v1573_v41 = vadd.f32 %v2639_v8, %v2682_v9  ;;  %v2993_v34 = vld [vmem:[#allocation14_spill] sm:$0xff]  ;;  %v2998_v47 = vld [vmem:[#allocation19_spill] sm:$0xff]  ;;  %v3000_v11 = vld [vmem:[#allocation20_spill] sm:$0xff] }
  0xf6   : > { %v1346_v13 = vadd.f32 %v2989_v30, %v1340_v56  ;;  %v1534_v26 = vadd.f32 %v1532_v52, %v1528_v53  ;;  %v1436_v12 = vadd.f32 %v2990_v10, %v1430_v44  ;;  %v1538_v62 = vmul.f32 %v2991_v32, %v2391_v60  ;;  %v2999_v40 = vld [vmem:[#allocation10_spill] sm:$0xff]  ;;  %v3001_v54 = vld [vmem:[#allocation7_spill] sm:$0xff]  ;;  %v3002_v56 = vld [vmem:[#allocation16_spill] sm:$0xff] }
  0xf7   : > { %1970 = vmatmul.msk.f32.gmra.mxu2 %vm949_vm2, %v1166_v49  ;;  %v1262_v61 = vmul.f32 %v2621_v51, %v1260_v15  ;;  %v1351_v1 = vadd.f32 %v2992_v43, %v1345_v18  ;;  %v1664_v37 = vmul.f32 %v1662_v46, %v2399_v2  ;;  %v1544_v59 = vmul.f32 %v2994_v5, %v2420_v21  ;;  %v1668_v18 = vld [vmem:[#allocation2 + $0x92] sm:$0xff]  ;;  %v3004_v10 = vld [vmem:[#allocation12_spill] sm:$0xff]  ;;  %v1566_v43 = vld [vmem:[#allocation2 + $0x88] sm:$0xff] }
  0xf8   : > { %v1352_v35 = vadd.f32 %v2993_v34, %v1346_v13  ;;  %v1263_v52 = vmul.f32 %v2621_v51, %v1261_v0  ;;  %v1442_v28 = vadd.f32 %v2995_v38, %v1436_v12  ;;  %v1540_v9 = vadd.f32 %v1538_v62, %v1534_v26  ;;  %v3003_v0 = vld [vmem:[#allocation11_spill] sm:$0xff]  ;;  %v1560_v13 = vld [vmem:[#allocation2 + $0x87] sm:$0xff] }
  0xf9   : > { %v1264_v23 = vadd.f32 %v2639_v8, %v1262_v61  ;;  %v1357_v4 = vadd.f32 %v2996_v25, %v1351_v1  ;;  %v1660_v19 = vadd.f32 %v1658_v45, %v1654_v48  ;;  %v1550_v57 = vmul.f32 %v2998_v47, %v2463_v42 }
  0xfa   : > { %v1358_v55 = vadd.f32 %v2997_v7, %v1352_v35  ;;  %v1448_v39 = vadd.f32 %v2999_v40, %v1442_v28  ;;  %v1467_v24 = vadd.f32 %v3000_v11, %v2659_v29  ;;  %v1546_v27 = vadd.f32 %v1544_v59, %v1540_v9 }
  0xfb   : > { %v1266_v20 = vmax.f32 %v1264_v23, 0.0  ;;  %v1363_v3 = vadd.f32 %v3001_v54, %v1357_v4  ;;  %v1575_v49 = vmax.f32 %v1573_v41, 0.0  ;;  %v1556_v45 = vmul.f32 %v2756_v50, %v2396_v63 }
  0xfc   : > { %v1364_v53 = vadd.f32 %v3002_v56, %v1358_v55  ;;  %v1265_v31 = vadd.f32 %v2639_v8, %v1263_v52  ;;  %v1454_v44 = vadd.f32 %v3003_v0, %v1448_v39  ;;  %v1552_v30 = vadd.f32 %v1550_v57, %v1546_v27  ;;  %v3005_v52 = vld [vmem:[#allocation13_spill] sm:$0xff] }
  0xfd   : > { %v1268_v15 = vmin.f32 %v1266_v20, 6.0  ;;  %v1365_v29 = vmul.f32 %v2621_v51, %v1363_v3  ;;  %v1666_v48 = vadd.f32 %v1664_v37, %v1660_v19  ;;  %v1670_v26 = vmul.f32 %v2425_v22, %v1668_v18  ;;  %v1759_v27 = vld [vmem:[#allocation2 + $0xa2] sm:$0xff] }
  0xfe   : > { %v1562_v61 = vmul.f32 %v1560_v13, %v2399_v2  ;;  %v1460_v12 = vadd.f32 %v3004_v10, %v1454_v44  ;;  %v1366_v41 = vmul.f32 %v2621_v51, %v1364_v53  ;;  %v1558_v62 = vadd.f32 %v1556_v45, %v1552_v30  ;;  %v1765_v45 = vld [vmem:[#allocation2 + $0xa3] sm:$0xff] }
  0xff   : > { %1975 = vmatmul.msk.f32.vlgmr.msrb.gmra.mxu3 %vm949_vm2, %v1268_v15  ;;  %v1725_v1 = vmul.f32 %v2500_v6, %v2364_v16  ;;  %v1367_v34 = vadd.f32 %v2639_v8, %v1365_v29  ;;  %v1568_v35 = vmul.f32 %v2425_v22, %v1566_v43  ;;  %v1731_v37 = vmul.f32 %v2517_v17, %v2359_v14  ;;  %v1771_v30 = vld [vmem:[#allocation2 + $0xa4] sm:$0xff] }
 0x100   : > { %v1737_v59 = vmul.f32 %v2599_v36, %v2374_v33  ;;  %v1267_v23 = vmax.f32 %v1265_v31, 0.0  ;;  %v1466_v38 = vadd.f32 %v3005_v52, %v1460_v12  ;;  %v1564_v28 = vadd.f32 %v1562_v61, %v1558_v62 }
 0x101   : > { %v1369_v9 = vmax.f32 %v1367_v34, 0.0  ;;  %v1672_v25 = vadd.f32 %v1670_v26, %v1666_v48  ;;  %v1733_v4 = vadd.f32 %v1731_v37, %v1725_v1  ;;  %v1743_v6 = vmul.f32 %v2703_v58, %v2391_v60  ;;  %v1657_v48 = vld [vmem:[#allocation2 + $0x98] sm:$0xff] }
 0x102   : > { %v1468_v7 = vmul.f32 %v2621_v51, %v1466_v38  ;;  %v1368_v55 = vadd.f32 %v2639_v8, %v1366_v41  ;;  %v1577_v19 = vmin.f32 %v1575_v49, 6.0  ;;  %v1469_v17 = vmul.f32 %v2621_v51, %v1467_v24  ;;  %v1663_v37 = vld [vmem:[#allocation2 + $0x99] sm:$0xff] }
 0x103   : > { %v1371_v57 = vmin.f32 %v1369_v9, 6.0  ;;  %v1570_v20 = vadd.f32 %v1568_v35, %v1564_v28  ;;  %v1739_v36 = vadd.f32 %v1737_v59, %v1733_v4  ;;  %v1749_v40 = vmul.f32 %v1662_v46, %v2420_v21  ;;  %v1669_v38 = vld [vmem:[#allocation2 + $0x9a] sm:$0xff] }
 0x104   : > { %v1269_v39 = vmin.f32 %v1267_v23, 6.0  ;;  %v1470_v11 = vadd.f32 %v2639_v8, %v1468_v7  ;;  %v1623_v54 = vmul.f32 %v2991_v32, %v2364_v16  ;;  %v1629_v58 = vmul.f32 %v2994_v5, %v2359_v14 }
 0x105   : > { %1981 = vmatmul.msk.f32.vlgmr.msra.gmra.mxu1 %vm949_vm2, %v1371_v57  ;;  %v1674_v3 = vmul.f32 %v2621_v51, %v1672_v25  ;;  %v1745_v24 = vadd.f32 %v1743_v6, %v1739_v36  ;;  %v1755_v56 = vmul.f32 %v1668_v18, %v2463_v42  ;;  %v1635_v46 = vmul.f32 %v2998_v47, %v2374_v33  ;;  %v1760_v6 = vld [vmem:[#allocation2 + $0xaa] sm:$0xff] }
 0x106   : > { %v1472_v53 = vmax.f32 %v1470_v11, 0.0  ;;  %v1370_v49 = vmax.f32 %v1368_v55, 0.0  ;;  %v1631_v15 = vadd.f32 %v1629_v58, %v1623_v54  ;;  %v1641_v32 = vmul.f32 %v2756_v50, %v2391_v60 }
 0x107   : > { %1976 = vmatmul.msk.f32.gmra.mxu3 %vm949_vm2, %v1269_v39  ;;  %v1471_v5 = vadd.f32 %v2639_v8, %v1469_v17  ;;  %v1572_v31 = vmul.f32 %v2621_v51, %v1570_v20  ;;  %v1751_v0 = vadd.f32 %v1749_v40, %v1745_v24  ;;  %v1761_v44 = vmul.f32 %v1759_v27, %v2396_v63  ;;  %v1766_v27 = vld [vmem:[#allocation2 + $0xab] sm:$0xff] }
 0x108   : > { %v1474_v18 = vmin.f32 %v1472_v53, 6.0  ;;  %v1637_v29 = vadd.f32 %v1635_v46, %v1631_v15  ;;  %v1647_v47 = vmul.f32 %v1560_v13, %v2420_v21  ;;  %v1726_v26 = vmul.f32 %v2756_v50, %v2364_v16 }
 0x109   : > { %v1757_v61 = vadd.f32 %v1755_v56, %v1751_v0  ;;  %v1767_v10 = vmul.f32 %v1765_v45, %v2399_v2  ;;  %v1732_v12 = vmul.f32 %v1560_v13, %v2359_v14  ;;  %v1738_v41 = vmul.f32 %v1566_v43, %v2374_v33  ;;  %v1772_v56 = vld [vmem:[#allocation2 + $0xac] sm:$0xff] }
 0x10a   : > { %1987 = vmatmul.msk.f32.vlgmr.msra.gmra.mxu2 %vm949_vm2, %v1474_v18  ;;  %v1372_v62 = vmin.f32 %v1370_v49, 6.0  ;;  %v1676_v1 = vadd.f32 %v2639_v8, %v1674_v3  ;;  %v1643_v34 = vadd.f32 %v1641_v32, %v1637_v29  ;;  %v1653_v35 = vmul.f32 %v1566_v43, %v2463_v42 }
 0x10b   : > { %v1763_v59 = vadd.f32 %v1761_v44, %v1757_v61  ;;  %v1773_v23 = vmul.f32 %v2425_v22, %v1771_v30  ;;  %v1734_v16 = vadd.f32 %v1732_v12, %v1726_v26  ;;  %v1744_v50 = vmul.f32 %v1657_v48, %v2391_v60 }
 0x10c   : > { %v1473_v52 = vmax.f32 %v1471_v5, 0.0  ;;  %v1574_v14 = vadd.f32 %v2639_v8, %v1572_v31  ;;  %v1649_v13 = vadd.f32 %v1647_v47, %v1643_v34  ;;  %v1659_v33 = vmul.f32 %v1657_v48, %v2396_v63  ;;  %v1099_v48 = vld [vmem:[%s2844_s22] sm:$0xff] }
 0x10d   : > { %1982 = vmatmul.msk.f32.gmra.mxu1 %vm949_vm2, %v1372_v62  ;;  %v1769_v28 = vadd.f32 %v1767_v10, %v1763_v59  ;;  %v1740_v9 = vadd.f32 %v1738_v41, %v1734_v16  ;;  %v1750_v43 = vmul.f32 %v1663_v37, %v2420_v21  ;;  %v1665_v4 = vmul.f32 %v1663_v37, %v2399_v2  ;;  %v1100_v41 = vld [vmem:[%s2844_s22 + $0x8] sm:$0xff]  ;;  %v1971_v37 = vld [vmem:[%s2844_s22 + $0x10] sm:$0xff] }
 0x10e   : > { %v1655_v25 = vadd.f32 %v1653_v35, %v1649_v13  ;;  %v1678_v60 = vmax.f32 %v1676_v1, 0.0  ;;  %v1756_v17 = vmul.f32 %v1669_v38, %v2463_v42  ;;  %v1475_v57 = vmin.f32 %v1473_v52, 6.0  ;;  %v1972_v52 = vld [vmem:[%s2844_s22 + $0x18] sm:$0xff] }
 0x10f   : > { %1993 = vmatmul.msk.f32.vlgmr.msra.gmra.mxu3 %vm949_vm2, %v1577_v19  ;;  %v1775_v7 = vadd.f32 %v1773_v23, %v1769_v28  ;;  %v1746_v55 = vadd.f32 %v1744_v50, %v1740_v9  ;;  %v1576_v20 = vmax.f32 %v1574_v14, 0.0  ;;  %v1671_v40 = vmul.f32 %v2425_v22, %v1669_v38  ;;  %v1977_v9 = vld [vmem:[%s2844_s22 + $0x20] sm:$0xff] }
 0x110   : > { %v1661_v36 = vadd.f32 %v1659_v33, %v1655_v25  ;;  %v1762_v21 = vmul.f32 %v1760_v6, %v2396_v63  ;;  %v1680_v54 = vmin.f32 %v1678_v60, 6.0  ;;  %v1768_v49 = vmul.f32 %v1766_v27, %v2399_v2 }
 0x111   : > { %v1777_v39 = vmul.f32 %v2621_v51, %v1775_v7  ;;  %v1752_v11 = vadd.f32 %v1750_v43, %v1746_v55  ;;  %v1578_v24 = vmin.f32 %v1576_v20, 6.0  ;;  %v1774_v15 = vmul.f32 %v2425_v22, %v1772_v56  ;;  %v2839_v22 = vld [vmem:[%s2960_s9] ss:$0 sm:$0xff]  ;;  %v1978_v20 = vld [vmem:[%s2844_s22 + $0x28] sm:$0xff] }
 0x112   : > { %1988 = vmatmul.msk.f32.gmra.mxu2 %vm949_vm2, %v1475_v57  ;;  %v1667_v19 = vadd.f32 %v1665_v4, %v1661_v36  ;;  %v1983_v4 = vld [vmem:[%s2844_s22 + $0x30] sm:$0xff] }
 0x113   : > { %v1779_v58 = vadd.f32 %v2639_v8, %v1777_v39  ;;  %v1758_v3 = vadd.f32 %v1756_v17, %v1752_v11  ;;  %v1984_v39 = vld [vmem:[%s2844_s22 + $0x38] sm:$0xff] }
 0x114   : > { %v1673_v42 = vadd.f32 %v1671_v40, %v1667_v19 }
 0x115   : > { %1999 = vmatmul.msk.f32.vlgmr.msrb.gmra.mxu1 %vm949_vm2, %v1680_v54  ;;  %v1781_v46 = vmax.f32 %v1779_v58, 0.0  ;;  %v1764_v53 = vadd.f32 %v1762_v21, %v1758_v3  ;;  %v1989_v58 = vld [vmem:[%s2844_s22 + $0x40] sm:$0xff] }
 0x116   : > { %v1675_v63 = vmul.f32 %v2621_v51, %v1673_v42 }
 0x117   : > { %1994 = vmatmul.msk.f32.gmra.mxu3 %vm949_vm2, %v1578_v24  ;;  %v1770_v45 = vadd.f32 %v1768_v49, %v1764_v53  ;;  %v1783_v32 = vmin.f32 %v1781_v46, 6.0  ;;  %v1995_v53 = vld [vmem:[%s2844_s22 + $0x50] sm:$0xff] }
 0x118   : > { %v1677_v5 = vadd.f32 %v2639_v8, %v1675_v63 }
 0x119   : > { %v1776_v31 = vadd.f32 %v1774_v15, %v1770_v45  ;;  %v2001_v45 = vld [vmem:[%s2844_s22 + $0x60] sm:$0xff] }
 0x11a   : > { %2005 = vmatmul.msk.f32.vlgmr.msrb.gmra.mxu2 %vm949_vm2, %v1783_v32  ;;  %v1679_v0 = vmax.f32 %v1677_v5, 0.0 }
 0x11b   : > { %v1778_v44 = vmul.f32 %v2621_v51, %v1776_v31  ;;  %v2849_v51 = vld [vmem:[%s2961_s10] ss:$0 sm:$0xff] }
 0x11c   : > { %v1681_v18 = vmin.f32 %v1679_v0, 6.0 }
 0x11d   : > { %v1780_v2 = vadd.f32 %v2639_v8, %v1778_v44  ;;  %v1990_v44 = vld [vmem:[%s2844_s22 + $0x48] sm:$0xff] }
 0x11e   : > { %2000 = vmatmul.msk.f32.gmra.mxu1 %vm949_vm2, %v1681_v18 }
 0x11f   : > { %v1782_v30 = vmax.f32 %v1780_v2, 0.0 }
 0x121   : > { %v1784_v29 = vmin.f32 %v1782_v30, 6.0 }
 0x123   : > { %2006 = vmatmul.msk.f32.gmra.mxu2 %vm949_vm2, %v1784_v29 }
 0x15c   : > { %v1083_v8 = vpop.f32.mrf.mxu1 }
 0x15d   : > { %v1092_v47 = vmul.f32 %v2839_v22, %v1083_v8  ;;  %v1996_v8 = vld [vmem:[%s2844_s22 + $0x58] sm:$0xff] }
 0x15f   : > { %v1097_v26 = vadd.f32 %v2849_v51, %v1092_v47 }
 0x161   : > { %v1101_v61 = vadd.f32 %v1099_v48, %v1097_v26 }
 0x163   : > { %1103 = vst.msk [vmem:[%s2857_s30] sm:$0xff] %vm528_vm1, %v1101_v61  ;;  %v2002_v61 = vld [vmem:[%s2844_s22 + $0x68] sm:$0xff] }
 0x164   : > { %v1086_v10 = vpop.f32.mrf.mxu1 }
 0x165   : > { %v1093_v12 = vmul.f32 %v2839_v22, %v1086_v10 }
 0x167   : > { %v1098_v62 = vadd.f32 %v2849_v51, %v1093_v12 }
 0x169   : > { %v1102_v1 = vadd.f32 %v1100_v41, %v1098_v62 }
 0x16b   : > { %1104 = vst.msk [vmem:[%s2857_s30 + $0x8] sm:$0xff] %vm528_vm1, %v1102_v1  ;;  %v2007_v1 = vld [vmem:[%s2844_s22 + $0x70] sm:$0xff] }
 0x172   : > { %v1190_v34 = vpop.f32.mrf.mxu2 }
 0x173   : > { %v1196_v35 = vmul.f32 %v2839_v22, %v1190_v34 }
 0x175   : > { %v1198_v59 = vadd.f32 %v2849_v51, %v1196_v35 }
 0x177   : > { %v1203_v23 = vadd.f32 %v1971_v37, %v1198_v59 }
 0x179   : > { %1973 = vst.msk [vmem:[%s2857_s30 + $0x10] sm:$0xff] %vm528_vm1, %v1203_v23 }
 0x17a   : > { %v1193_v16 = vpop.f32.mrf.mxu2 }
 0x17b   : > { %v1197_v50 = vmul.f32 %v2839_v22, %v1193_v16  ;;  %v2008_v16 = vld [vmem:[%s2844_s22 + $0x78] sm:$0xff] }
 0x17d   : > { %v1199_v14 = vadd.f32 %v2849_v51, %v1197_v50 }
 0x17f   : > { %v1204_v13 = vadd.f32 %v1972_v52, %v1199_v14 }
 0x181   : > { %1974 = vst.msk [vmem:[%s2857_s30 + $0x18] sm:$0xff] %vm528_vm1, %v1204_v13 }
 0x182   : > { %v1293_v33 = vpop.f32.mrf.mxu3  ;;  %v1396_v28 = vpop.f32.mrf.mxu1 }
 0x183   : > { %v1299_v38 = vmul.f32 %v2839_v22, %v1293_v33  ;;  %v1402_v43 = vmul.f32 %v2839_v22, %v1396_v28 }
 0x185   : > { %v1301_v25 = vadd.f32 %v2849_v51, %v1299_v38  ;;  %v1404_v6 = vadd.f32 %v2849_v51, %v1402_v43 }
 0x187   : > { %v1306_v60 = vadd.f32 %v1977_v9, %v1301_v25  ;;  %v1409_v7 = vadd.f32 %v1983_v4, %v1404_v6 }
 0x189   : > { %1979 = vst.msk [vmem:[%s2857_s30 + $0x20] sm:$0xff] %vm528_vm1, %v1306_v60 }
 0x18a   : > { %1985 = vst.msk [vmem:[%s2857_s30 + $0x30] sm:$0xff] %vm528_vm1, %v1409_v7  ;;  %v1296_v55 = vpop.f32.mrf.mxu3  ;;  %v1399_v57 = vpop.f32.mrf.mxu1 }
 0x18b   : > { %v1300_v17 = vmul.f32 %v2839_v22, %v1296_v55  ;;  %v1403_v36 = vmul.f32 %v2839_v22, %v1399_v57 }
 0x18d   : > { %v1302_v40 = vadd.f32 %v2849_v51, %v1300_v17  ;;  %v1405_v11 = vadd.f32 %v2849_v51, %v1403_v36  ;;  %v1499_v21 = vpop.f32.mrf.mxu2 }
 0x18e   : > { %v1505_v27 = vmul.f32 %v2839_v22, %v1499_v21 }
 0x18f   : > { %v1307_v19 = vadd.f32 %v1978_v20, %v1302_v40  ;;  %v1410_v54 = vadd.f32 %v1984_v39, %v1405_v11 }
 0x190   : > { %v1507_v3 = vadd.f32 %v2849_v51, %v1505_v27 }
 0x191   : > { %1980 = vst.msk [vmem:[%s2857_s30 + $0x28] sm:$0xff] %vm528_vm1, %v1307_v19 }
 0x192   : > { %1986 = vst.msk [vmem:[%s2857_s30 + $0x38] sm:$0xff] %vm528_vm1, %v1410_v54  ;;  %v1602_v24 = vpop.f32.mrf.mxu3  ;;  %v1512_v42 = vadd.f32 %v1989_v58, %v1507_v3  ;;  %v1705_v46 = vpop.f32.mrf.mxu1 }
 0x193   : > { %v1608_v56 = vmul.f32 %v2839_v22, %v1602_v24  ;;  %v1711_v49 = vmul.f32 %v2839_v22, %v1705_v46 }
 0x194   : > { %1991 = vst.msk [vmem:[%s2857_s30 + $0x40] sm:$0xff] %vm528_vm1, %v1512_v42 }
 0x195   : > { %v1610_v63 = vadd.f32 %v2849_v51, %v1608_v56  ;;  %v1713_v15 = vadd.f32 %v2849_v51, %v1711_v49  ;;  %v1502_v32 = vpop.f32.mrf.mxu2 }
 0x196   : > { %v1506_v31 = vmul.f32 %v2839_v22, %v1502_v32 }
 0x197   : > { %v1615_v5 = vadd.f32 %v1995_v53, %v1610_v63  ;;  %v1718_v0 = vadd.f32 %v2001_v45, %v1713_v15 }
 0x198   : > { %v1508_v18 = vadd.f32 %v2849_v51, %v1506_v31 }
 0x199   : > { %1997 = vst.msk [vmem:[%s2857_s30 + $0x50] sm:$0xff] %vm528_vm1, %v1615_v5 }
 0x19a   : > { %2003 = vst.msk [vmem:[%s2857_s30 + $0x60] sm:$0xff] %vm528_vm1, %v1718_v0  ;;  %v1605_v2 = vpop.f32.mrf.mxu3  ;;  %v1513_v30 = vadd.f32 %v1990_v44, %v1508_v18 }
 0x19b   : > { %v1609_v29 = vmul.f32 %v2839_v22, %v1605_v2  ;;  %v1708_v47 = vpop.f32.mrf.mxu1 }
 0x19c   : > { %1992 = vst.msk [vmem:[%s2857_s30 + $0x48] sm:$0xff] %vm528_vm1, %v1513_v30  ;;  %v1712_v26 = vmul.f32 %v2839_v22, %v1708_v47 }
 0x19d   : > { %v1611_v48 = vadd.f32 %v2849_v51, %v1609_v29  ;;  %v1808_v10 = vpop.f32.mrf.mxu2 }
 0x19e   : > { %v1714_v41 = vadd.f32 %v2849_v51, %v1712_v26  ;;  %v1814_v62 = vmul.f32 %v2839_v22, %v1808_v10 }
 0x19f   : > { %v1616_v12 = vadd.f32 %v1996_v8, %v1611_v48 }
 0x1a0   : > { %v1719_v34 = vadd.f32 %v2002_v61, %v1714_v41  ;;  %v1816_v35 = vadd.f32 %v2849_v51, %v1814_v62 }
 0x1a1   : > { %1998 = vst.msk [vmem:[%s2857_s30 + $0x58] sm:$0xff] %vm528_vm1, %v1616_v12 }
 0x1a2   : > { %2004 = vst.msk [vmem:[%s2857_s30 + $0x68] sm:$0xff] %vm528_vm1, %v1719_v34  ;;  %v1821_v37 = vadd.f32 %v2007_v1, %v1816_v35 }
 0x1a4   : > { %2009 = vst.msk [vmem:[%s2857_s30 + $0x70] sm:$0xff] %vm528_vm1, %v1821_v37 }
 0x1a6   : > { %v1811_v59 = vpop.f32.mrf.mxu2 }
 0x1a7   : > { %v1815_v23 = vmul.f32 %v2839_v22, %v1811_v59 }
 0x1a9   : > { %v1817_v50 = vadd.f32 %v2849_v51, %v1815_v23 }
 0x1ab   : > { %v1822_v52 = vadd.f32 %v2008_v16, %v1817_v50 }
 0x1ad   : > { %2010 = vst.msk [vmem:[%s2857_s30 + $0x78] sm:$0xff] %vm528_vm1, %v1822_v52 }
 0x1ae PF: > { %s22_s25 = sadd.s32 1, %s2109_s25   ;;  %s3006_s21 = smov %s2101_s23 }
 0x1af   : > { %p19_p7 = scmp.ge.s32.totalorder %s22_s25, 6   ;;  %s3007_s22 = smov %s2105_s24 }
 0x1b0   : > { %s3008_s23 = smov %s3011_s26  ;;  %s3009_s24 = smov %s3015_s27 }
 0x1b1   :  { %21 = sbr.rel (!%p19_p7) target bundleno = 3 (0x3), region = 118 }

</bundles_post_ra>
